<compile_context>
chip_gen: v6e
topology: v6e:2x2x1
jax: 0.10.0
libtpu: 0.0.40
codegen_flags: <defaults>
</compile_context>

<pallas_src>
import jax
import jax.numpy as jnp
from jax.experimental import pallas as pl
from jax.experimental.pallas import tpu as pltpu

EPS = 1e-5

# Sizes implied by the module (fc1 = Linear(16*22, 32)  =>  13x13 input image).
IMG = 13
K = 4                       # all conv kernel sizes
C1, C2, C3 = 8, 8, 16       # conv output channels
HID = 32                    # fc1 width
L1 = (IMG - K + 1) ** 2     # 100 : conv1 output, flattened 10x10
L2 = L1 - K + 1             # 97  : conv2 output length
P1 = L2 // 2                # 48  : after MaxPool1d(2, 2)
L3 = P1 - K + 1             # 45  : conv3 output length
P2 = L3 // 2                # 22  : after MaxPool1d(2, 2)  (16*22 == 352 == fc1 in)


# ----------------------------------------------------------------------------
# In-kernel helpers (traced inside the Pallas kernel body)
# ----------------------------------------------------------------------------
def _even_odd_select(n_in, n_out, parity):
    """0/1 selection matrix S (n_in, n_out) with S[k, j] = 1 iff k == 2*j + parity."""
    rows = jax.lax.broadcasted_iota(jnp.int32, (n_in, n_out), 0)
    cols = jax.lax.broadcasted_iota(jnp.int32, (n_in, n_out), 1)
    return (rows == 2 * cols + parity).astype(jnp.float32)


def _maxpool2_lanes(y):
    """nn.MaxPool1d(2, 2) along the lane (last) axis of a 2-D value.

    Implemented as two 0/1-selection matmuls + jnp.maximum so it stays on the
    MXU/VPU and avoids strided lane gathers or minor-dim reshapes.
    """
    n_in = y.shape[-1]
    n_out = n_in // 2
    even = jnp.dot(y, _even_odd_select(n_in, n_out, 0),
                   preferred_element_type=jnp.float32)
    odd = jnp.dot(y, _even_odd_select(n_in, n_out, 1),
                  preferred_element_type=jnp.float32)
    return jnp.maximum(even, odd)


# ----------------------------------------------------------------------------
# The fused kernel: one grid step == one batch sample
# ----------------------------------------------------------------------------
def _fused_cnn_kernel(xp_ref,             # (1, 16, 100) conv1 im2col patches
                      w1_ref, b1_ref,     # (8, 16), (8, 1)      BN1 folded
                      w2_ref, b2_ref,     # (4, 8, 8), (8, 1)    BN2 folded [tap, Cout, Cin]
                      w3_ref, b3_ref,     # (4, 16, 8), (16, 1)  BN3 folded
                      wf1_ref, bf1_ref,   # (16, 22, 32), (1, 32) BN5 folded
                      wf2_ref, bf2_ref,   # (32, num_classes), (1, num_classes)
                      o_ref):             # (1, 1, num_classes)
    f32 = jnp.float32

    # ---- conv1 + BN1 + ReLU : (8,16) @ (16,100) -> (8,100), spatial on lanes
    y = jnp.dot(w1_ref[...], xp_ref[0], preferred_element_type=f32)
    y = jnp.maximum(y + b1_ref[...], 0.0)                       # (8, 100)

    # ---- conv2 (k=4) + BN2 + ReLU : 4 shifted-slice matmuls, then pool ------
    taps = w2_ref.shape[0]
    L = y.shape[-1] - taps + 1                                  # 97
    y2 = jnp.dot(w2_ref[0], y[:, 0:L], preferred_element_type=f32)
    for t in range(1, taps):
        y2 = y2 + jnp.dot(w2_ref[t], y[:, t:t + L], preferred_element_type=f32)
    y2 = jnp.maximum(y2 + b2_ref[...], 0.0)                     # (8, 97)
    y2 = _maxpool2_lanes(y2)                                    # (8, 48)

    # ---- conv3 (k=4) + BN3 + ReLU, then pool --------------------------------
    taps = w3_ref.shape[0]
    L = y2.shape[-1] - taps + 1                                 # 45
    y3 = jnp.dot(w3_ref[0], y2[:, 0:L], preferred_element_type=f32)
    for t in range(1, taps):
        y3 = y3 + jnp.dot(w3_ref[t], y2[:, t:t + L], preferred_element_type=f32)
    y3 = jnp.maximum(y3 + b3_ref[...], 0.0)                     # (16, 45)
    y3 = _maxpool2_lanes(y3)                                    # (16, 22)

    # ---- fc1 + BN5 + ReLU ----------------------------------------------------
    # PyTorch x.view(B, -1) flattens channel-major; wf1 is pre-reordered on the
    # host to (C, L, HID) so the flatten never materializes: accumulate over C.
    h = jnp.dot(y3[0:1, :], wf1_ref[0], preferred_element_type=f32)
    for c in range(1, wf1_ref.shape[0]):
        h = h + jnp.dot(y3[c:c + 1, :], wf1_ref[c], preferred_element_type=f32)
    h = jnp.maximum(h + bf1_ref[...], 0.0)                      # (1, 32)
    # dropout: identity in eval mode.

    # ---- fc2 -----------------------------------------------------------------
    out = jnp.dot(h, wf2_ref[...], preferred_element_type=f32) + bf2_ref[...]
    o_ref[0] = out                                              # (1, num_classes)


# ----------------------------------------------------------------------------
# Host-side wrapper
# ----------------------------------------------------------------------------
def _const_spec(shape):
    """Full-array block that is identical for every grid step (weights/biases)."""
    zeros = (0,) * len(shape)
    return pl.BlockSpec(shape, lambda b: zeros)


def _conv1_patches(x):
    """x: (B, 1, 13, 13) -> (B, 16, 100); patch index = kh*4+kw, pos = i*10+j.

    This matches PyTorch's conv1 weight flatten (C_in=1, kh, kw) and the
    subsequent x.view(B, C, -1) row-major (i, j) flatten.
    """
    B = x.shape[0]
    Ho = IMG - K + 1
    xs = x[:, 0]                                                # (B, 13, 13)
    cols = [xs[:, di:di + Ho, dj:dj + Ho].reshape(B, Ho * Ho)
            for di in range(K) for dj in range(K)]
    return jnp.stack(cols, axis=1)                              # (B, 16, 100)


def cnn_forward(x, p):
    """Eval-mode forward of CNNModel.  x: (B, 1, 13, 13) float32 (NCHW)."""
    B = x.shape[0]
    num_classes = p["fc2_w"].shape[0]
    f32 = jnp.float32

    # ---- fold BatchNorm into weights / biases (host side, tiny) -------------
    def fold(w, b, g, beta, m, v):
        s = g * jax.lax.rsqrt(v + EPS)
        return (w * s.reshape((-1,) + (1,) * (w.ndim - 1)),
                (b - m) * s + beta)

    w1, b1 = fold(p["conv1_w"].astype(f32), p["conv1_b"],
                  p["bn1_g"], p["bn1_b"], p["bn1_m"], p["bn1_v"])
    w1 = w1.reshape(C1, K * K)                      # (8, 16); K order (kh, kw)
    b1 = b1.reshape(C1, 1)

    w2, b2 = fold(p["conv2_w"].astype(f32), p["conv2_b"],
                  p["bn2_g"], p["bn2_b"], p["bn2_m"], p["bn2_v"])
    w2 = jnp.transpose(w2, (2, 0, 1))               # (4, 8, 8) = [tap, Cout, Cin]
    b2 = b2.reshape(C2, 1)

    w3, b3 = fold(p["conv3_w"].astype(f32), p["conv3_b"],
                  p["bn3_g"], p["bn3_b"], p["bn3_m"], p["bn3_v"])
    w3 = jnp.transpose(w3, (2, 0, 1))               # (4, 16, 8)
    b3 = b3.reshape(C3, 1)

    wf1, bf1 = fold(p["fc1_w"].astype(f32), p["fc1_b"],
                    p["bn5_g"], p["bn5_b"], p["bn5_m"], p["bn5_v"])
    wf1 = jnp.transpose(wf1.reshape(HID, C3, P2), (1, 2, 0))    # (16, 22, 32)
    bf1 = bf1.reshape(1, HID)

    wf2 = p["fc2_w"].astype(f32).T                  # (32, num_classes)
    bf2 = p["fc2_b"].astype(f32).reshape(1, num_classes)

    # conv1 im2col on the raw input: the only layout glue outside the kernel.
    xp = _conv1_patches(x.astype(f32))              # (B, 16, 100)

    out = pl.pallas_call(
        _fused_cnn_kernel,
        grid=(B,),
        in_specs=[
            pl.BlockSpec((1, K * K, L1), lambda b: (b, 0, 0)),
            _const_spec((C1, K * K)), _const_spec((C1, 1)),
            _const_spec((K, C2, C1)), _const_spec((C2, 1)),
            _const_spec((K, C3, C2)), _const_spec((C3, 1)),
            _const_spec((C3, P2, HID)), _const_spec((1, HID)),
            _const_spec((HID, num_classes)), _const_spec((1, num_classes)),
        ],
        out_specs=pl.BlockSpec((1, 1, num_classes), lambda b: (b, 0, 0)),
        out_shape=jax.ShapeDtypeStruct((B, 1, num_classes), f32),
        compiler_params=pltpu.CompilerParams(
            dimension_semantics=("parallel",),  # megacore-shard batch on v7x
        ),
    )(xp, w1, b1, w2, b2, w3, b3, wf1, bf1, wf2, bf2)
    return out[:, 0, :]                              # (B, num_classes)


# ----------------------------------------------------------------------------
# Deterministic parameters (PyTorch-equivalent shapes, eval-mode BN stats)
# ----------------------------------------------------------------------------
def init_params(key, num_classes=3):
    ks = jax.random.split(key, 16)
    p = {}
    p["conv1_w"] = jax.random.normal(ks[0], (8, 1, 4, 4), jnp.float32) * 0.1
    p["conv1_b"] = jax.random.normal(ks[1], (8,), jnp.float32) * 0.1
    p["conv2_w"] = jax.random.normal(ks[2], (8, 8, 4), jnp.float32) * 0.1
    p["conv2_b"] = jax.random.normal(ks[3], (8,), jnp.float32) * 0.1
    p["conv3_w"] = jax.random.normal(ks[4], (16, 8, 4), jnp.float32) * 0.1
    p["conv3_b"] = jax.random.normal(ks[5], (16,), jnp.float32) * 0.1
    p["fc1_w"] = jax.random.normal(ks[6], (32, 16 * 22), jnp.float32) * 0.05
    p["fc1_b"] = jax.random.normal(ks[7], (32,), jnp.float32) * 0.1
    p["fc2_w"] = jax.random.normal(ks[8], (num_classes, 32), jnp.float32) * 0.1
    p["fc2_b"] = jax.random.normal(ks[9], (num_classes,), jnp.float32) * 0.1

    def bn(k, n):
        kg, kb, km, kv = jax.random.split(k, 4)
        return (1.0 + 0.1 * jax.random.normal(kg, (n,), jnp.float32),
                0.1 * jax.random.normal(kb, (n,), jnp.float32),
                0.1 * jax.random.normal(km, (n,), jnp.float32),
                jax.random.uniform(kv, (n,), jnp.float32, 0.5, 1.5))

    p["bn1_g"], p["bn1_b"], p["bn1_m"], p["bn1_v"] = bn(ks[10], 8)
    p["bn2_g"], p["bn2_b"], p["bn2_m"], p["bn2_v"] = bn(ks[11], 8)
    p["bn3_g"], p["bn3_b"], p["bn3_m"], p["bn3_v"] = bn(ks[12], 16)
    p["bn5_g"], p["bn5_b"], p["bn5_m"], p["bn5_v"] = bn(ks[13], 32)
    return p


# ----------------------------------------------------------------------------
# Plain-JAX/XLA reference (eval mode) used only for a sanity cross-check
# ----------------------------------------------------------------------------
def _ref_bn(y, g, b, m, v):
    sh = (1, -1) + (1,) * (y.ndim - 2)
    return (y - m.reshape(sh)) * (g * jax.lax.rsqrt(v + EPS)).reshape(sh) + b.reshape(sh)


def _ref_conv1d(x, w, b):
    y = jax.lax.conv_general_dilated(
        x[:, :, None, :], w[:, :, None, :], window_strides=(1, 1),
        padding="VALID", dimension_numbers=("NCHW", "OIHW", "NCHW"))
    return y[:, :, 0, :] + b.reshape(1, -1, 1)


def _ref_pool2(y):
    B, C, L = y.shape
    Lo = L // 2
    return y[:, :, :2 * Lo].reshape(B, C, Lo, 2).max(axis=-1)


def cnn_forward_reference(x, p):
    B = x.shape[0]
    y = jax.lax.conv_general_dilated(
        x, p["conv1_w"], window_strides=(1, 1), padding="VALID",
        dimension_numbers=("NCHW", "OIHW", "NCHW"))
    y = y + p["conv1_b"].reshape(1, -1, 1, 1)
    y = jnp.maximum(_ref_bn(y, p["bn1_g"], p["bn1_b"], p["bn1_m"], p["bn1_v"]), 0.0)
    y = y.reshape(B, C1, -1)
    y = _ref_bn(_ref_conv1d(y, p["conv2_w"], p["conv2_b"]),
                p["bn2_g"], p["bn2_b"], p["bn2_m"], p["bn2_v"])
    y = _ref_pool2(jnp.maximum(y, 0.0))
    y = _ref_bn(_ref_conv1d(y, p["conv3_w"], p["conv3_b"]),
                p["bn3_g"], p["bn3_b"], p["bn3_m"], p["bn3_v"])
    y = _ref_pool2(jnp.maximum(y, 0.0))
    y = y.reshape(B, -1)
    y = jnp.maximum(_ref_bn(y @ p["fc1_w"].T + p["fc1_b"],
                            p["bn5_g"], p["bn5_b"], p["bn5_m"], p["bn5_v"]), 0.0)
    return y @ p["fc2_w"].T + p["fc2_b"]


if __name__ == "__main__":
    key = jax.random.PRNGKey(0)
    kx, kp = jax.random.split(key)

    # Shape implied by the module: fc1 = Linear(16*22, 32) -> 13x13 input image.
    x = jax.random.normal(kx, (2, 1, 13, 13), jnp.float32)   # NCHW, like PyTorch
    params = init_params(kp, num_classes=3)

    out = jax.jit(cnn_forward)(x, params)
    out = jax.block_until_ready(out)
    assert out.shape == (2, 3), out.shape

    # Sanity cross-check of the fused Pallas kernel vs a plain-XLA reference.
    ref = jax.block_until_ready(jax.jit(cnn_forward_reference)(x, params))
    err = float(jnp.max(jnp.abs(out - ref)))
    assert err < 2e-2, f"mismatch vs reference: max abs err = {err}"

    print("KERNEL_OK")
</pallas_src>

<mosaic_0001>
module attributes {stable_mosaic.version = 11 : i64} {
  func.func @_fused_cnn_kernel(%arg0: i32, %arg1: memref<1x16x100xf32, #tpu.memory_space<vmem>>, %arg2: memref<8x16xf32, #tpu.memory_space<vmem>>, %arg3: memref<8x1xf32, #tpu.memory_space<vmem>>, %arg4: memref<4x8x8xf32, #tpu.memory_space<vmem>>, %arg5: memref<8x1xf32, #tpu.memory_space<vmem>>, %arg6: memref<4x16x8xf32, #tpu.memory_space<vmem>>, %arg7: memref<16x1xf32, #tpu.memory_space<vmem>>, %arg8: memref<16x22x32xf32, #tpu.memory_space<vmem>>, %arg9: memref<1x32xf32, #tpu.memory_space<vmem>>, %arg10: memref<32x3xf32, #tpu.memory_space<vmem>>, %arg11: memref<1x3xf32, #tpu.memory_space<vmem>>, %arg12: memref<1x1x3xf32, #tpu.memory_space<vmem>>) attributes {dimension_semantics = [#tpu.dimension_semantics<parallel>], iteration_bounds = array<i64: 2>, scalar_prefetch = 0 : i64, scratch_operands = 0 : i64, tpu.core_type = #tpu.core_type<tc>, window_params = [{transform_indices = @transform_0, window_bounds = array<i64: 1, 16, 100>}, {pipeline_mode = #tpu.pipeline_mode<synchronous>, transform_indices = @transform_1, window_bounds = array<i64: 8, 16>}, {pipeline_mode = #tpu.pipeline_mode<synchronous>, transform_indices = @transform_2, window_bounds = array<i64: 8, 1>}, {pipeline_mode = #tpu.pipeline_mode<synchronous>, transform_indices = @transform_3, window_bounds = array<i64: 4, 8, 8>}, {pipeline_mode = #tpu.pipeline_mode<synchronous>, transform_indices = @transform_4, window_bounds = array<i64: 8, 1>}, {pipeline_mode = #tpu.pipeline_mode<synchronous>, transform_indices = @transform_5, window_bounds = array<i64: 4, 16, 8>}, {pipeline_mode = #tpu.pipeline_mode<synchronous>, transform_indices = @transform_6, window_bounds = array<i64: 16, 1>}, {pipeline_mode = #tpu.pipeline_mode<synchronous>, transform_indices = @transform_7, window_bounds = array<i64: 16, 22, 32>}, {pipeline_mode = #tpu.pipeline_mode<synchronous>, transform_indices = @transform_8, window_bounds = array<i64: 1, 32>}, {pipeline_mode = #tpu.pipeline_mode<synchronous>, transform_indices = @transform_9, window_bounds = array<i64: 32, 3>}, {pipeline_mode = #tpu.pipeline_mode<synchronous>, transform_indices = @transform_10, window_bounds = array<i64: 1, 3>}, {transform_indices = @transform_11, window_bounds = array<i64: 1, 1, 3>}]} {
    %c0 = arith.constant 0 : index
    %c0_0 = arith.constant 0 : index
    %0 = vector.load %arg2[%c0, %c0_0] : memref<8x16xf32, #tpu.memory_space<vmem>>, vector<8x16xf32>
    %c0_1 = arith.constant 0 : index
    %c0_2 = arith.constant 0 : index
    %c0_3 = arith.constant 0 : index
    %1 = vector.load %arg1[%c0_1, %c0_2, %c0_3] : memref<1x16x100xf32, #tpu.memory_space<vmem>>, vector<1x16x100xf32>
    %2 = vector.shape_cast %1 : vector<1x16x100xf32> to vector<16x100xf32>
    %cst = arith.constant dense<0.000000e+00> : vector<8x100xf32>
    %3 = tpu.matmul %0, %2, %cst {dimension_numbers = #tpu.dot_dimension_numbers<[1], [0], [0], [1], [0, 0, 1, 1], [], []>} : vector<8x16xf32>, vector<16x100xf32>, vector<8x100xf32> -> vector<8x100xf32>
    %c0_4 = arith.constant 0 : index
    %c0_5 = arith.constant 0 : index
    %4 = vector.load %arg3[%c0_4, %c0_5] : memref<8x1xf32, #tpu.memory_space<vmem>>, vector<8x1xf32>
    %5 = vector.broadcast %4 : vector<8x1xf32> to vector<8x100xf32>
    %6 = arith.addf %3, %5 : vector<8x100xf32>
    %cst_6 = arith.constant 0.000000e+00 : f32
    %7 = vector.broadcast %cst_6 : f32 to vector<8x100xf32>
    %8 = arith.maximumf %6, %7 : vector<8x100xf32>
    %c0_7 = arith.constant 0 : index
    %c0_8 = arith.constant 0 : index
    %c0_9 = arith.constant 0 : index
    %9 = vector.load %arg4[%c0_7, %c0_8, %c0_9] : memref<4x8x8xf32, #tpu.memory_space<vmem>>, vector<1x8x8xf32>
    %10 = vector.shape_cast %9 : vector<1x8x8xf32> to vector<8x8xf32>
    %11 = vector.extract_strided_slice %8 {offsets = [0, 0], sizes = [8, 97], strides = [1, 1]} : vector<8x100xf32> to vector<8x97xf32>
    %cst_10 = arith.constant dense<0.000000e+00> : vector<8x97xf32>
    %12 = tpu.matmul %10, %11, %cst_10 {dimension_numbers = #tpu.dot_dimension_numbers<[1], [0], [0], [1], [0, 0, 1, 1], [], []>} : vector<8x8xf32>, vector<8x97xf32>, vector<8x97xf32> -> vector<8x97xf32>
    %c1 = arith.constant 1 : index
    %c0_11 = arith.constant 0 : index
    %c0_12 = arith.constant 0 : index
    %13 = vector.load %arg4[%c1, %c0_11, %c0_12] : memref<4x8x8xf32, #tpu.memory_space<vmem>>, vector<1x8x8xf32>
    %14 = vector.shape_cast %13 : vector<1x8x8xf32> to vector<8x8xf32>
    %15 = vector.extract_strided_slice %8 {offsets = [0, 1], sizes = [8, 97], strides = [1, 1]} : vector<8x100xf32> to vector<8x97xf32>
    %cst_13 = arith.constant dense<0.000000e+00> : vector<8x97xf32>
    %16 = tpu.matmul %14, %15, %cst_13 {dimension_numbers = #tpu.dot_dimension_numbers<[1], [0], [0], [1], [0, 0, 1, 1], [], []>} : vector<8x8xf32>, vector<8x97xf32>, vector<8x97xf32> -> vector<8x97xf32>
    %17 = arith.addf %12, %16 : vector<8x97xf32>
    %c2 = arith.constant 2 : index
    %c0_14 = arith.constant 0 : index
    %c0_15 = arith.constant 0 : index
    %18 = vector.load %arg4[%c2, %c0_14, %c0_15] : memref<4x8x8xf32, #tpu.memory_space<vmem>>, vector<1x8x8xf32>
    %19 = vector.shape_cast %18 : vector<1x8x8xf32> to vector<8x8xf32>
    %20 = vector.extract_strided_slice %8 {offsets = [0, 2], sizes = [8, 97], strides = [1, 1]} : vector<8x100xf32> to vector<8x97xf32>
    %cst_16 = arith.constant dense<0.000000e+00> : vector<8x97xf32>
    %21 = tpu.matmul %19, %20, %cst_16 {dimension_numbers = #tpu.dot_dimension_numbers<[1], [0], [0], [1], [0, 0, 1, 1], [], []>} : vector<8x8xf32>, vector<8x97xf32>, vector<8x97xf32> -> vector<8x97xf32>
    %22 = arith.addf %17, %21 : vector<8x97xf32>
    %c3 = arith.constant 3 : index
    %c0_17 = arith.constant 0 : index
    %c0_18 = arith.constant 0 : index
    %23 = vector.load %arg4[%c3, %c0_17, %c0_18] : memref<4x8x8xf32, #tpu.memory_space<vmem>>, vector<1x8x8xf32>
    %24 = vector.shape_cast %23 : vector<1x8x8xf32> to vector<8x8xf32>
    %25 = vector.extract_strided_slice %8 {offsets = [0, 3], sizes = [8, 97], strides = [1, 1]} : vector<8x100xf32> to vector<8x97xf32>
    %cst_19 = arith.constant dense<0.000000e+00> : vector<8x97xf32>
    %26 = tpu.matmul %24, %25, %cst_19 {dimension_numbers = #tpu.dot_dimension_numbers<[1], [0], [0], [1], [0, 0, 1, 1], [], []>} : vector<8x8xf32>, vector<8x97xf32>, vector<8x97xf32> -> vector<8x97xf32>
    %27 = arith.addf %22, %26 : vector<8x97xf32>
    %c0_20 = arith.constant 0 : index
    %c0_21 = arith.constant 0 : index
    %28 = vector.load %arg5[%c0_20, %c0_21] : memref<8x1xf32, #tpu.memory_space<vmem>>, vector<8x1xf32>
    %29 = vector.broadcast %28 : vector<8x1xf32> to vector<8x97xf32>
    %30 = arith.addf %27, %29 : vector<8x97xf32>
    %cst_22 = arith.constant 0.000000e+00 : f32
    %31 = vector.broadcast %cst_22 : f32 to vector<8x97xf32>
    %32 = arith.maximumf %30, %31 : vector<8x97xf32>
    %33 = tpu.iota {dimensions = array<i32: 0>} : vector<97x48xi32>
    %34 = tpu.iota {dimensions = array<i32: 1>} : vector<97x48xi32>
    %c2_i32 = arith.constant 2 : i32
    %35 = vector.broadcast %c2_i32 : i32 to vector<97x48xi32>
    %36 = arith.muli %35, %34 : vector<97x48xi32>
    %c0_i32 = arith.constant 0 : i32
    %37 = vector.broadcast %c0_i32 : i32 to vector<97x48xi32>
    %38 = arith.addi %36, %37 : vector<97x48xi32>
    %39 = arith.cmpi eq, %33, %38 : vector<97x48xi32>
    %40 = arith.extui %39 : vector<97x48xi1> to vector<97x48xi32>
    %41 = arith.sitofp %40 : vector<97x48xi32> to vector<97x48xf32>
    %cst_23 = arith.constant dense<0.000000e+00> : vector<8x48xf32>
    %42 = tpu.matmul %32, %41, %cst_23 {dimension_numbers = #tpu.dot_dimension_numbers<[1], [0], [0], [1], [0, 0, 1, 1], [], []>} : vector<8x97xf32>, vector<97x48xf32>, vector<8x48xf32> -> vector<8x48xf32>
    %43 = tpu.iota {dimensions = array<i32: 0>} : vector<97x48xi32>
    %44 = tpu.iota {dimensions = array<i32: 1>} : vector<97x48xi32>
    %c2_i32_24 = arith.constant 2 : i32
    %45 = vector.broadcast %c2_i32_24 : i32 to vector<97x48xi32>
    %46 = arith.muli %45, %44 : vector<97x48xi32>
    %c1_i32 = arith.constant 1 : i32
    %47 = vector.broadcast %c1_i32 : i32 to vector<97x48xi32>
    %48 = arith.addi %46, %47 : vector<97x48xi32>
    %49 = arith.cmpi eq, %43, %48 : vector<97x48xi32>
    %50 = arith.extui %49 : vector<97x48xi1> to vector<97x48xi32>
    %51 = arith.sitofp %50 : vector<97x48xi32> to vector<97x48xf32>
    %cst_25 = arith.constant dense<0.000000e+00> : vector<8x48xf32>
    %52 = tpu.matmul %32, %51, %cst_25 {dimension_numbers = #tpu.dot_dimension_numbers<[1], [0], [0], [1], [0, 0, 1, 1], [], []>} : vector<8x97xf32>, vector<97x48xf32>, vector<8x48xf32> -> vector<8x48xf32>
    %53 = arith.maximumf %42, %52 : vector<8x48xf32>
    %c0_26 = arith.constant 0 : index
    %c0_27 = arith.constant 0 : index
    %c0_28 = arith.constant 0 : index
    %54 = vector.load %arg6[%c0_26, %c0_27, %c0_28] : memref<4x16x8xf32, #tpu.memory_space<vmem>>, vector<1x16x8xf32>
    %55 = vector.shape_cast %54 : vector<1x16x8xf32> to vector<16x8xf32>
    %56 = vector.extract_strided_slice %53 {offsets = [0, 0], sizes = [8, 45], strides = [1, 1]} : vector<8x48xf32> to vector<8x45xf32>
    %cst_29 = arith.constant dense<0.000000e+00> : vector<16x45xf32>
    %57 = tpu.matmul %55, %56, %cst_29 {dimension_numbers = #tpu.dot_dimension_numbers<[1], [0], [0], [1], [0, 0, 1, 1], [], []>} : vector<16x8xf32>, vector<8x45xf32>, vector<16x45xf32> -> vector<16x45xf32>
    %c1_30 = arith.constant 1 : index
    %c0_31 = arith.constant 0 : index
    %c0_32 = arith.constant 0 : index
    %58 = vector.load %arg6[%c1_30, %c0_31, %c0_32] : memref<4x16x8xf32, #tpu.memory_space<vmem>>, vector<1x16x8xf32>
    %59 = vector.shape_cast %58 : vector<1x16x8xf32> to vector<16x8xf32>
    %60 = vector.extract_strided_slice %53 {offsets = [0, 1], sizes = [8, 45], strides = [1, 1]} : vector<8x48xf32> to vector<8x45xf32>
    %cst_33 = arith.constant dense<0.000000e+00> : vector<16x45xf32>
    %61 = tpu.matmul %59, %60, %cst_33 {dimension_numbers = #tpu.dot_dimension_numbers<[1], [0], [0], [1], [0, 0, 1, 1], [], []>} : vector<16x8xf32>, vector<8x45xf32>, vector<16x45xf32> -> vector<16x45xf32>
    %62 = arith.addf %57, %61 : vector<16x45xf32>
    %c2_34 = arith.constant 2 : index
    %c0_35 = arith.constant 0 : index
    %c0_36 = arith.constant 0 : index
    %63 = vector.load %arg6[%c2_34, %c0_35, %c0_36] : memref<4x16x8xf32, #tpu.memory_space<vmem>>, vector<1x16x8xf32>
    %64 = vector.shape_cast %63 : vector<1x16x8xf32> to vector<16x8xf32>
    %65 = vector.extract_strided_slice %53 {offsets = [0, 2], sizes = [8, 45], strides = [1, 1]} : vector<8x48xf32> to vector<8x45xf32>
    %cst_37 = arith.constant dense<0.000000e+00> : vector<16x45xf32>
    %66 = tpu.matmul %64, %65, %cst_37 {dimension_numbers = #tpu.dot_dimension_numbers<[1], [0], [0], [1], [0, 0, 1, 1], [], []>} : vector<16x8xf32>, vector<8x45xf32>, vector<16x45xf32> -> vector<16x45xf32>
    %67 = arith.addf %62, %66 : vector<16x45xf32>
    %c3_38 = arith.constant 3 : index
    %c0_39 = arith.constant 0 : index
    %c0_40 = arith.constant 0 : index
    %68 = vector.load %arg6[%c3_38, %c0_39, %c0_40] : memref<4x16x8xf32, #tpu.memory_space<vmem>>, vector<1x16x8xf32>
    %69 = vector.shape_cast %68 : vector<1x16x8xf32> to vector<16x8xf32>
    %70 = vector.extract_strided_slice %53 {offsets = [0, 3], sizes = [8, 45], strides = [1, 1]} : vector<8x48xf32> to vector<8x45xf32>
    %cst_41 = arith.constant dense<0.000000e+00> : vector<16x45xf32>
    %71 = tpu.matmul %69, %70, %cst_41 {dimension_numbers = #tpu.dot_dimension_numbers<[1], [0], [0], [1], [0, 0, 1, 1], [], []>} : vector<16x8xf32>, vector<8x45xf32>, vector<16x45xf32> -> vector<16x45xf32>
    %72 = arith.addf %67, %71 : vector<16x45xf32>
    %c0_42 = arith.constant 0 : index
    %c0_43 = arith.constant 0 : index
    %73 = vector.load %arg7[%c0_42, %c0_43] : memref<16x1xf32, #tpu.memory_space<vmem>>, vector<16x1xf32>
    %74 = vector.broadcast %73 : vector<16x1xf32> to vector<16x45xf32>
    %75 = arith.addf %72, %74 : vector<16x45xf32>
    %cst_44 = arith.constant 0.000000e+00 : f32
    %76 = vector.broadcast %cst_44 : f32 to vector<16x45xf32>
    %77 = arith.maximumf %75, %76 : vector<16x45xf32>
    %78 = tpu.iota {dimensions = array<i32: 0>} : vector<45x22xi32>
    %79 = tpu.iota {dimensions = array<i32: 1>} : vector<45x22xi32>
    %c2_i32_45 = arith.constant 2 : i32
    %80 = vector.broadcast %c2_i32_45 : i32 to vector<45x22xi32>
    %81 = arith.muli %80, %79 : vector<45x22xi32>
    %c0_i32_46 = arith.constant 0 : i32
    %82 = vector.broadcast %c0_i32_46 : i32 to vector<45x22xi32>
    %83 = arith.addi %81, %82 : vector<45x22xi32>
    %84 = arith.cmpi eq, %78, %83 : vector<45x22xi32>
    %85 = arith.extui %84 : vector<45x22xi1> to vector<45x22xi32>
    %86 = arith.sitofp %85 : vector<45x22xi32> to vector<45x22xf32>
    %cst_47 = arith.constant dense<0.000000e+00> : vector<16x22xf32>
    %87 = tpu.matmul %77, %86, %cst_47 {dimension_numbers = #tpu.dot_dimension_numbers<[1], [0], [0], [1], [0, 0, 1, 1], [], []>} : vector<16x45xf32>, vector<45x22xf32>, vector<16x22xf32> -> vector<16x22xf32>
    %88 = tpu.iota {dimensions = array<i32: 0>} : vector<45x22xi32>
    %89 = tpu.iota {dimensions = array<i32: 1>} : vector<45x22xi32>
    %c2_i32_48 = arith.constant 2 : i32
    %90 = vector.broadcast %c2_i32_48 : i32 to vector<45x22xi32>
    %91 = arith.muli %90, %89 : vector<45x22xi32>
    %c1_i32_49 = arith.constant 1 : i32
    %92 = vector.broadcast %c1_i32_49 : i32 to vector<45x22xi32>
    %93 = arith.addi %91, %92 : vector<45x22xi32>
    %94 = arith.cmpi eq, %88, %93 : vector<45x22xi32>
    %95 = arith.extui %94 : vector<45x22xi1> to vector<45x22xi32>
    %96 = arith.sitofp %95 : vector<45x22xi32> to vector<45x22xf32>
    %cst_50 = arith.constant dense<0.000000e+00> : vector<16x22xf32>
    %97 = tpu.matmul %77, %96, %cst_50 {dimension_numbers = #tpu.dot_dimension_numbers<[1], [0], [0], [1], [0, 0, 1, 1], [], []>} : vector<16x45xf32>, vector<45x22xf32>, vector<16x22xf32> -> vector<16x22xf32>
    %98 = arith.maximumf %87, %97 : vector<16x22xf32>
    %99 = vector.extract_strided_slice %98 {offsets = [0, 0], sizes = [1, 22], strides = [1, 1]} : vector<16x22xf32> to vector<1x22xf32>
    %c0_51 = arith.constant 0 : index
    %c0_52 = arith.constant 0 : index
    %c0_53 = arith.constant 0 : index
    %100 = vector.load %arg8[%c0_51, %c0_52, %c0_53] : memref<16x22x32xf32, #tpu.memory_space<vmem>>, vector<1x22x32xf32>
    %101 = vector.shape_cast %100 : vector<1x22x32xf32> to vector<22x32xf32>
    %cst_54 = arith.constant dense<0.000000e+00> : vector<1x32xf32>
    %102 = tpu.matmul %99, %101, %cst_54 {dimension_numbers = #tpu.dot_dimension_numbers<[1], [0], [0], [1], [0, 0, 1, 1], [], []>} : vector<1x22xf32>, vector<22x32xf32>, vector<1x32xf32> -> vector<1x32xf32>
    %103 = vector.extract_strided_slice %98 {offsets = [1, 0], sizes = [1, 22], strides = [1, 1]} : vector<16x22xf32> to vector<1x22xf32>
    %c1_55 = arith.constant 1 : index
    %c0_56 = arith.constant 0 : index
    %c0_57 = arith.constant 0 : index
    %104 = vector.load %arg8[%c1_55, %c0_56, %c0_57] : memref<16x22x32xf32, #tpu.memory_space<vmem>>, vector<1x22x32xf32>
    %105 = vector.shape_cast %104 : vector<1x22x32xf32> to vector<22x32xf32>
    %cst_58 = arith.constant dense<0.000000e+00> : vector<1x32xf32>
    %106 = tpu.matmul %103, %105, %cst_58 {dimension_numbers = #tpu.dot_dimension_numbers<[1], [0], [0], [1], [0, 0, 1, 1], [], []>} : vector<1x22xf32>, vector<22x32xf32>, vector<1x32xf32> -> vector<1x32xf32>
    %107 = arith.addf %102, %106 : vector<1x32xf32>
    %108 = vector.extract_strided_slice %98 {offsets = [2, 0], sizes = [1, 22], strides = [1, 1]} : vector<16x22xf32> to vector<1x22xf32>
    %c2_59 = arith.constant 2 : index
    %c0_60 = arith.constant 0 : index
    %c0_61 = arith.constant 0 : index
    %109 = vector.load %arg8[%c2_59, %c0_60, %c0_61] : memref<16x22x32xf32, #tpu.memory_space<vmem>>, vector<1x22x32xf32>
    %110 = vector.shape_cast %109 : vector<1x22x32xf32> to vector<22x32xf32>
    %cst_62 = arith.constant dense<0.000000e+00> : vector<1x32xf32>
    %111 = tpu.matmul %108, %110, %cst_62 {dimension_numbers = #tpu.dot_dimension_numbers<[1], [0], [0], [1], [0, 0, 1, 1], [], []>} : vector<1x22xf32>, vector<22x32xf32>, vector<1x32xf32> -> vector<1x32xf32>
    %112 = arith.addf %107, %111 : vector<1x32xf32>
    %113 = vector.extract_strided_slice %98 {offsets = [3, 0], sizes = [1, 22], strides = [1, 1]} : vector<16x22xf32> to vector<1x22xf32>
    %c3_63 = arith.constant 3 : index
    %c0_64 = arith.constant 0 : index
    %c0_65 = arith.constant 0 : index
    %114 = vector.load %arg8[%c3_63, %c0_64, %c0_65] : memref<16x22x32xf32, #tpu.memory_space<vmem>>, vector<1x22x32xf32>
    %115 = vector.shape_cast %114 : vector<1x22x32xf32> to vector<22x32xf32>
    %cst_66 = arith.constant dense<0.000000e+00> : vector<1x32xf32>
    %116 = tpu.matmul %113, %115, %cst_66 {dimension_numbers = #tpu.dot_dimension_numbers<[1], [0], [0], [1], [0, 0, 1, 1], [], []>} : vector<1x22xf32>, vector<22x32xf32>, vector<1x32xf32> -> vector<1x32xf32>
    %117 = arith.addf %112, %116 : vector<1x32xf32>
    %118 = vector.extract_strided_slice %98 {offsets = [4, 0], sizes = [1, 22], strides = [1, 1]} : vector<16x22xf32> to vector<1x22xf32>
    %c4 = arith.constant 4 : index
    %c0_67 = arith.constant 0 : index
    %c0_68 = arith.constant 0 : index
    %119 = vector.load %arg8[%c4, %c0_67, %c0_68] : memref<16x22x32xf32, #tpu.memory_space<vmem>>, vector<1x22x32xf32>
    %120 = vector.shape_cast %119 : vector<1x22x32xf32> to vector<22x32xf32>
    %cst_69 = arith.constant dense<0.000000e+00> : vector<1x32xf32>
    %121 = tpu.matmul %118, %120, %cst_69 {dimension_numbers = #tpu.dot_dimension_numbers<[1], [0], [0], [1], [0, 0, 1, 1], [], []>} : vector<1x22xf32>, vector<22x32xf32>, vector<1x32xf32> -> vector<1x32xf32>
    %122 = arith.addf %117, %121 : vector<1x32xf32>
    %123 = vector.extract_strided_slice %98 {offsets = [5, 0], sizes = [1, 22], strides = [1, 1]} : vector<16x22xf32> to vector<1x22xf32>
    %c5 = arith.constant 5 : index
    %c0_70 = arith.constant 0 : index
    %c0_71 = arith.constant 0 : index
    %124 = vector.load %arg8[%c5, %c0_70, %c0_71] : memref<16x22x32xf32, #tpu.memory_space<vmem>>, vector<1x22x32xf32>
    %125 = vector.shape_cast %124 : vector<1x22x32xf32> to vector<22x32xf32>
    %cst_72 = arith.constant dense<0.000000e+00> : vector<1x32xf32>
    %126 = tpu.matmul %123, %125, %cst_72 {dimension_numbers = #tpu.dot_dimension_numbers<[1], [0], [0], [1], [0, 0, 1, 1], [], []>} : vector<1x22xf32>, vector<22x32xf32>, vector<1x32xf32> -> vector<1x32xf32>
    %127 = arith.addf %122, %126 : vector<1x32xf32>
    %128 = vector.extract_strided_slice %98 {offsets = [6, 0], sizes = [1, 22], strides = [1, 1]} : vector<16x22xf32> to vector<1x22xf32>
    %c6 = arith.constant 6 : index
    %c0_73 = arith.constant 0 : index
    %c0_74 = arith.constant 0 : index
    %129 = vector.load %arg8[%c6, %c0_73, %c0_74] : memref<16x22x32xf32, #tpu.memory_space<vmem>>, vector<1x22x32xf32>
    %130 = vector.shape_cast %129 : vector<1x22x32xf32> to vector<22x32xf32>
    %cst_75 = arith.constant dense<0.000000e+00> : vector<1x32xf32>
    %131 = tpu.matmul %128, %130, %cst_75 {dimension_numbers = #tpu.dot_dimension_numbers<[1], [0], [0], [1], [0, 0, 1, 1], [], []>} : vector<1x22xf32>, vector<22x32xf32>, vector<1x32xf32> -> vector<1x32xf32>
    %132 = arith.addf %127, %131 : vector<1x32xf32>
    %133 = vector.extract_strided_slice %98 {offsets = [7, 0], sizes = [1, 22], strides = [1, 1]} : vector<16x22xf32> to vector<1x22xf32>
    %c7 = arith.constant 7 : index
    %c0_76 = arith.constant 0 : index
    %c0_77 = arith.constant 0 : index
    %134 = vector.load %arg8[%c7, %c0_76, %c0_77] : memref<16x22x32xf32, #tpu.memory_space<vmem>>, vector<1x22x32xf32>
    %135 = vector.shape_cast %134 : vector<1x22x32xf32> to vector<22x32xf32>
    %cst_78 = arith.constant dense<0.000000e+00> : vector<1x32xf32>
    %136 = tpu.matmul %133, %135, %cst_78 {dimension_numbers = #tpu.dot_dimension_numbers<[1], [0], [0], [1], [0, 0, 1, 1], [], []>} : vector<1x22xf32>, vector<22x32xf32>, vector<1x32xf32> -> vector<1x32xf32>
    %137 = arith.addf %132, %136 : vector<1x32xf32>
    %138 = vector.extract_strided_slice %98 {offsets = [8, 0], sizes = [1, 22], strides = [1, 1]} : vector<16x22xf32> to vector<1x22xf32>
    %c8 = arith.constant 8 : index
    %c0_79 = arith.constant 0 : index
    %c0_80 = arith.constant 0 : index
    %139 = vector.load %arg8[%c8, %c0_79, %c0_80] : memref<16x22x32xf32, #tpu.memory_space<vmem>>, vector<1x22x32xf32>
    %140 = vector.shape_cast %139 : vector<1x22x32xf32> to vector<22x32xf32>
    %cst_81 = arith.constant dense<0.000000e+00> : vector<1x32xf32>
    %141 = tpu.matmul %138, %140, %cst_81 {dimension_numbers = #tpu.dot_dimension_numbers<[1], [0], [0], [1], [0, 0, 1, 1], [], []>} : vector<1x22xf32>, vector<22x32xf32>, vector<1x32xf32> -> vector<1x32xf32>
    %142 = arith.addf %137, %141 : vector<1x32xf32>
    %143 = vector.extract_strided_slice %98 {offsets = [9, 0], sizes = [1, 22], strides = [1, 1]} : vector<16x22xf32> to vector<1x22xf32>
    %c9 = arith.constant 9 : index
    %c0_82 = arith.constant 0 : index
    %c0_83 = arith.constant 0 : index
    %144 = vector.load %arg8[%c9, %c0_82, %c0_83] : memref<16x22x32xf32, #tpu.memory_space<vmem>>, vector<1x22x32xf32>
    %145 = vector.shape_cast %144 : vector<1x22x32xf32> to vector<22x32xf32>
    %cst_84 = arith.constant dense<0.000000e+00> : vector<1x32xf32>
    %146 = tpu.matmul %143, %145, %cst_84 {dimension_numbers = #tpu.dot_dimension_numbers<[1], [0], [0], [1], [0, 0, 1, 1], [], []>} : vector<1x22xf32>, vector<22x32xf32>, vector<1x32xf32> -> vector<1x32xf32>
    %147 = arith.addf %142, %146 : vector<1x32xf32>
    %148 = vector.extract_strided_slice %98 {offsets = [10, 0], sizes = [1, 22], strides = [1, 1]} : vector<16x22xf32> to vector<1x22xf32>
    %c10 = arith.constant 10 : index
    %c0_85 = arith.constant 0 : index
    %c0_86 = arith.constant 0 : index
    %149 = vector.load %arg8[%c10, %c0_85, %c0_86] : memref<16x22x32xf32, #tpu.memory_space<vmem>>, vector<1x22x32xf32>
    %150 = vector.shape_cast %149 : vector<1x22x32xf32> to vector<22x32xf32>
    %cst_87 = arith.constant dense<0.000000e+00> : vector<1x32xf32>
    %151 = tpu.matmul %148, %150, %cst_87 {dimension_numbers = #tpu.dot_dimension_numbers<[1], [0], [0], [1], [0, 0, 1, 1], [], []>} : vector<1x22xf32>, vector<22x32xf32>, vector<1x32xf32> -> vector<1x32xf32>
    %152 = arith.addf %147, %151 : vector<1x32xf32>
    %153 = vector.extract_strided_slice %98 {offsets = [11, 0], sizes = [1, 22], strides = [1, 1]} : vector<16x22xf32> to vector<1x22xf32>
    %c11 = arith.constant 11 : index
    %c0_88 = arith.constant 0 : index
    %c0_89 = arith.constant 0 : index
    %154 = vector.load %arg8[%c11, %c0_88, %c0_89] : memref<16x22x32xf32, #tpu.memory_space<vmem>>, vector<1x22x32xf32>
    %155 = vector.shape_cast %154 : vector<1x22x32xf32> to vector<22x32xf32>
    %cst_90 = arith.constant dense<0.000000e+00> : vector<1x32xf32>
    %156 = tpu.matmul %153, %155, %cst_90 {dimension_numbers = #tpu.dot_dimension_numbers<[1], [0], [0], [1], [0, 0, 1, 1], [], []>} : vector<1x22xf32>, vector<22x32xf32>, vector<1x32xf32> -> vector<1x32xf32>
    %157 = arith.addf %152, %156 : vector<1x32xf32>
    %158 = vector.extract_strided_slice %98 {offsets = [12, 0], sizes = [1, 22], strides = [1, 1]} : vector<16x22xf32> to vector<1x22xf32>
    %c12 = arith.constant 12 : index
    %c0_91 = arith.constant 0 : index
    %c0_92 = arith.constant 0 : index
    %159 = vector.load %arg8[%c12, %c0_91, %c0_92] : memref<16x22x32xf32, #tpu.memory_space<vmem>>, vector<1x22x32xf32>
    %160 = vector.shape_cast %159 : vector<1x22x32xf32> to vector<22x32xf32>
    %cst_93 = arith.constant dense<0.000000e+00> : vector<1x32xf32>
    %161 = tpu.matmul %158, %160, %cst_93 {dimension_numbers = #tpu.dot_dimension_numbers<[1], [0], [0], [1], [0, 0, 1, 1], [], []>} : vector<1x22xf32>, vector<22x32xf32>, vector<1x32xf32> -> vector<1x32xf32>
    %162 = arith.addf %157, %161 : vector<1x32xf32>
    %163 = vector.extract_strided_slice %98 {offsets = [13, 0], sizes = [1, 22], strides = [1, 1]} : vector<16x22xf32> to vector<1x22xf32>
    %c13 = arith.constant 13 : index
    %c0_94 = arith.constant 0 : index
    %c0_95 = arith.constant 0 : index
    %164 = vector.load %arg8[%c13, %c0_94, %c0_95] : memref<16x22x32xf32, #tpu.memory_space<vmem>>, vector<1x22x32xf32>
    %165 = vector.shape_cast %164 : vector<1x22x32xf32> to vector<22x32xf32>
    %cst_96 = arith.constant dense<0.000000e+00> : vector<1x32xf32>
    %166 = tpu.matmul %163, %165, %cst_96 {dimension_numbers = #tpu.dot_dimension_numbers<[1], [0], [0], [1], [0, 0, 1, 1], [], []>} : vector<1x22xf32>, vector<22x32xf32>, vector<1x32xf32> -> vector<1x32xf32>
    %167 = arith.addf %162, %166 : vector<1x32xf32>
    %168 = vector.extract_strided_slice %98 {offsets = [14, 0], sizes = [1, 22], strides = [1, 1]} : vector<16x22xf32> to vector<1x22xf32>
    %c14 = arith.constant 14 : index
    %c0_97 = arith.constant 0 : index
    %c0_98 = arith.constant 0 : index
    %169 = vector.load %arg8[%c14, %c0_97, %c0_98] : memref<16x22x32xf32, #tpu.memory_space<vmem>>, vector<1x22x32xf32>
    %170 = vector.shape_cast %169 : vector<1x22x32xf32> to vector<22x32xf32>
    %cst_99 = arith.constant dense<0.000000e+00> : vector<1x32xf32>
    %171 = tpu.matmul %168, %170, %cst_99 {dimension_numbers = #tpu.dot_dimension_numbers<[1], [0], [0], [1], [0, 0, 1, 1], [], []>} : vector<1x22xf32>, vector<22x32xf32>, vector<1x32xf32> -> vector<1x32xf32>
    %172 = arith.addf %167, %171 : vector<1x32xf32>
    %173 = vector.extract_strided_slice %98 {offsets = [15, 0], sizes = [1, 22], strides = [1, 1]} : vector<16x22xf32> to vector<1x22xf32>
    %c15 = arith.constant 15 : index
    %c0_100 = arith.constant 0 : index
    %c0_101 = arith.constant 0 : index
    %174 = vector.load %arg8[%c15, %c0_100, %c0_101] : memref<16x22x32xf32, #tpu.memory_space<vmem>>, vector<1x22x32xf32>
    %175 = vector.shape_cast %174 : vector<1x22x32xf32> to vector<22x32xf32>
    %cst_102 = arith.constant dense<0.000000e+00> : vector<1x32xf32>
    %176 = tpu.matmul %173, %175, %cst_102 {dimension_numbers = #tpu.dot_dimension_numbers<[1], [0], [0], [1], [0, 0, 1, 1], [], []>} : vector<1x22xf32>, vector<22x32xf32>, vector<1x32xf32> -> vector<1x32xf32>
    %177 = arith.addf %172, %176 : vector<1x32xf32>
    %c0_103 = arith.constant 0 : index
    %c0_104 = arith.constant 0 : index
    %178 = vector.load %arg9[%c0_103, %c0_104] : memref<1x32xf32, #tpu.memory_space<vmem>>, vector<1x32xf32>
    %179 = arith.addf %177, %178 : vector<1x32xf32>
    %cst_105 = arith.constant 0.000000e+00 : f32
    %180 = vector.broadcast %cst_105 : f32 to vector<1x32xf32>
    %181 = arith.maximumf %179, %180 : vector<1x32xf32>
    %c0_106 = arith.constant 0 : index
    %c0_107 = arith.constant 0 : index
    %182 = vector.load %arg10[%c0_106, %c0_107] : memref<32x3xf32, #tpu.memory_space<vmem>>, vector<32x3xf32>
    %cst_108 = arith.constant dense<0.000000e+00> : vector<1x3xf32>
    %183 = tpu.matmul %181, %182, %cst_108 {dimension_numbers = #tpu.dot_dimension_numbers<[1], [0], [0], [1], [0, 0, 1, 1], [], []>} : vector<1x32xf32>, vector<32x3xf32>, vector<1x3xf32> -> vector<1x3xf32>
    %c0_109 = arith.constant 0 : index
    %c0_110 = arith.constant 0 : index
    %184 = vector.load %arg11[%c0_109, %c0_110] : memref<1x3xf32, #tpu.memory_space<vmem>>, vector<1x3xf32>
    %185 = arith.addf %183, %184 : vector<1x3xf32>
    %c0_111 = arith.constant 0 : index
    %c0_112 = arith.constant 0 : index
    %c0_113 = arith.constant 0 : index
    %186 = vector.load %arg12[%c0_111, %c0_112, %c0_113] : memref<1x1x3xf32, #tpu.memory_space<vmem>>, vector<1x1x3xf32>
    %187 = vector.shape_cast %186 : vector<1x1x3xf32> to vector<1x3xf32>
    %188 = vector.shape_cast %185 : vector<1x3xf32> to vector<1x1x3xf32>
    tpu.vector_store %arg12[%c0_111, %c0_112, %c0_113], %188 {strides = array<i32>} : memref<1x1x3xf32, #tpu.memory_space<vmem>>, vector<1x1x3xf32>,
    return
  }
  func.func @transform_0(%arg0: i32) -> (i32, i32, i32) {
    %c0_i32 = arith.constant 0 : i32
    %c0_i32_0 = arith.constant 0 : i32
    %c0_i32_1 = arith.constant 0 : i32
    return %arg0, %c0_i32, %c0_i32_0 : i32, i32, i32
  }
  func.func @transform_1(%arg0: i32) -> (i32, i32) {
    %c0_i32 = arith.constant 0 : i32
    %c0_i32_0 = arith.constant 0 : i32
    %c0_i32_1 = arith.constant 0 : i32
    return %c0_i32, %c0_i32_0 : i32, i32
  }
  func.func @transform_2(%arg0: i32) -> (i32, i32) {
    %c0_i32 = arith.constant 0 : i32
    %c0_i32_0 = arith.constant 0 : i32
    %c0_i32_1 = arith.constant 0 : i32
    return %c0_i32, %c0_i32_0 : i32, i32
  }
  func.func @transform_3(%arg0: i32) -> (i32, i32, i32) {
    %c0_i32 = arith.constant 0 : i32
    %c0_i32_0 = arith.constant 0 : i32
    %c0_i32_1 = arith.constant 0 : i32
    %c0_i32_2 = arith.constant 0 : i32
    return %c0_i32, %c0_i32_0, %c0_i32_1 : i32, i32, i32
  }
  func.func @transform_4(%arg0: i32) -> (i32, i32) {
    %c0_i32 = arith.constant 0 : i32
    %c0_i32_0 = arith.constant 0 : i32
    %c0_i32_1 = arith.constant 0 : i32
    return %c0_i32, %c0_i32_0 : i32, i32
  }
  func.func @transform_5(%arg0: i32) -> (i32, i32, i32) {
    %c0_i32 = arith.constant 0 : i32
    %c0_i32_0 = arith.constant 0 : i32
    %c0_i32_1 = arith.constant 0 : i32
    %c0_i32_2 = arith.constant 0 : i32
    return %c0_i32, %c0_i32_0, %c0_i32_1 : i32, i32, i32
  }
  func.func @transform_6(%arg0: i32) -> (i32, i32) {
    %c0_i32 = arith.constant 0 : i32
    %c0_i32_0 = arith.constant 0 : i32
    %c0_i32_1 = arith.constant 0 : i32
    return %c0_i32, %c0_i32_0 : i32, i32
  }
  func.func @transform_7(%arg0: i32) -> (i32, i32, i32) {
    %c0_i32 = arith.constant 0 : i32
    %c0_i32_0 = arith.constant 0 : i32
    %c0_i32_1 = arith.constant 0 : i32
    %c0_i32_2 = arith.constant 0 : i32
    return %c0_i32, %c0_i32_0, %c0_i32_1 : i32, i32, i32
  }
  func.func @transform_8(%arg0: i32) -> (i32, i32) {
    %c0_i32 = arith.constant 0 : i32
    %c0_i32_0 = arith.constant 0 : i32
    %c0_i32_1 = arith.constant 0 : i32
    return %c0_i32, %c0_i32_0 : i32, i32
  }
  func.func @transform_9(%arg0: i32) -> (i32, i32) {
    %c0_i32 = arith.constant 0 : i32
    %c0_i32_0 = arith.constant 0 : i32
    %c0_i32_1 = arith.constant 0 : i32
    return %c0_i32, %c0_i32_0 : i32, i32
  }
  func.func @transform_10(%arg0: i32) -> (i32, i32) {
    %c0_i32 = arith.constant 0 : i32
    %c0_i32_0 = arith.constant 0 : i32
    %c0_i32_1 = arith.constant 0 : i32
    return %c0_i32, %c0_i32_0 : i32, i32
  }
  func.func @transform_11(%arg0: i32) -> (i32, i32, i32) {
    %c0_i32 = arith.constant 0 : i32
    %c0_i32_0 = arith.constant 0 : i32
    %c0_i32_1 = arith.constant 0 : i32
    return %arg0, %c0_i32, %c0_i32_0 : i32, i32, i32
  }
}

</mosaic_0001>

<bundles_post_ra>
// kernel: cnn_forward.1
= control target key start
LH: loop header
LB: loop body
LE: loop exit
PB: predicated region body
PF: predicated region fallthrough
CT: control target
= control target key end

     0   :  { %s4531_s0 = inlined_call_operand.vmem [shape: f32[2,16,100], index: 0, kind: input, shape index: {}]   ;;  %s4532_s1 = inlined_call_operand.vmem [shape: f32[8,16], index: 1, kind: input, shape index: {}]   ;;  %s4533_s2 = inlined_call_operand.vmem [shape: f32[8,1], index: 2, kind: input, shape index: {}]   ;;  %s4534_s3 = inlined_call_operand.vmem [shape: f32[4,8,8], index: 3, kind: input, shape index: {}]   ;;  %s4535_s4 = inlined_call_operand.vmem [shape: f32[8,1], index: 4, kind: input, shape index: {}]   ;;  %s4536_s5 = inlined_call_operand.vmem [shape: f32[4,16,8], index: 5, kind: input, shape index: {}]   ;;  %s4537_s6 = inlined_call_operand.vmem [shape: f32[16,1], index: 6, kind: input, shape index: {}]   ;;  %s4538_s7 = inlined_call_operand.vmem [shape: f32[16,22,32], index: 7, kind: input, shape index: {}]   ;;  %s4539_s8 = inlined_call_operand.vmem [shape: f32[1,32], index: 8, kind: input, shape index: {}]   ;;  %s4540_s9 = inlined_call_operand.vmem [shape: f32[32,3], index: 9, kind: input, shape index: {}]   ;;  %s4541_s10 = inlined_call_operand.vmem [shape: f32[1,3], index: 10, kind: input, shape index: {}]   ;;  %s4542_s11 = inlined_call_operand.hbm [shape: f32[2,1,3], index: 11, kind: output, shape index: {}]  }
   0x1   :  { %4543 = sst [smem:[#allocation5_spill]] %s4531_s0 }
   0x2   :  { %16 = vsyncpa [#allocation3], 0 }
   0x3   :  { %18 = vsyncpa [#allocation3 + $0x1], 0  ;;  %s3798_s17 = smov 0   ;;  %s3800_s18 = smov 0  }
   0x4   :  { %s3802_s19 = smov 0   ;;  %s3804_s20 = smov 0  }
   0x5 LB: > { %s3819_s21 = sadd.s32 4294967295, %s3728_s20   ;;  %s3014_s22 = sadd.s32 4294967294, %s3728_s20   ;;  %s3728_s20 = sphi %s3804_s20, %s4550_s20   ;;  %s3724_s19 = sphi %s3802_s19, %s4549_s19   ;;  %s3720_s18 = sphi %s3800_s18, %s4548_s18   ;;  %s3716_s17 = sphi %s3798_s17, %s4547_s17  }
   0x6   : > { %s3823_s23 = sadd.s32 1, %s3728_s20   ;;  %s267_s24 = sadd.s32 1, %s3724_s19 }
   0x7   : > { %s264_s25 = ssub.s32 %s3728_s20, %s3823_s23  ;;  %p277_p0 = scmp.ne.s32.totalorder %s3724_s19, %s3720_s18 }
   0x8   : > { %p265_p1 = scmp.eq.s32.totalorder %s264_s25, 0  ;;  %p278_p2 = scmp.eq.s32.totalorder %s3819_s21, 1 }
   0x9   : > { %p283_p3 = scmp.ne.s32.totalorder %s3720_s18, %s3716_s17  ;;  %p284_p4 = scmp.eq.s32.totalorder %s3014_s22, 1 }
   0xa   : > { %s3834_s26 = scalar_select %p265_p1, %s3724_s19, %s267_s24  }
   0xb   : > { %p3836_p5 = por %p278_p2, %p277_p0  ;;  %p3840_p6 = por %p284_p4, %p283_p3 }
   0xc   : > { %p3017_p7 = scmp.ge.s32.totalorder %s3728_s20, 1  ;;  %p340_p8 = scmp.lt.s32.totalorder %s3728_s20, 3 }
   0xe   : > { %p341_p9 = pnand %p3017_p7, %p340_p8 }
   0xf   : > { %p379_p10 = scmp.lt.s32.totalorder (!%p341_p9), %s3819_s21, 1  ;;  %s4546_s0 = sld [smem:[#allocation5_spill]] (!%p341_p9) }
  0x10   : > { %344 = sbr.rel (%p341_p9) target bundleno = 1735 (0x6c7), region = 64  ;;  %s3733_s25 = smov (!%p341_p9), 126  }
  0x11   : > { %s3734_s29 = smov (!%p341_p9), 127   ;;  %s3190_s22 = sshll.u32 (!%p341_p9), %s3819_s21, 4 }
  0x15   : > { %v3730_v0 = vmov 0.0   ;;  %vm3731_vm0 = vmmov 0   ;;  %v387_v1 = vld [vmem:[%s4533_s2] sm:$0xff]  ;;  %s380_s12 = scalar_select %p379_p10, %s3819_s21, 1  ;;  %v3732_v2 = vmov 0   ;;  %vm393_vm1 = vcmask 130048  }
  0x16   : > { %3330 = vmatprep.subr.mxu0 %v3730_v0  ;;  %3334 = vmatprep.mubr.msk.f32.mxu0 %vm3731_vm0, %v3730_v0  ;;  %v384_v5 = vld [vmem:[%s4532_s1] sm:$0xff]  ;;  %v788_v11 = vlaneseq  ;;  %vm848_vm2 = vcmask 1040384   ;;  %v3736_v20 = vmov 1.0   ;;  %v3021_v21 = vld [vmem:[%s4534_s3 + $0x8] sm:$0xff]  ;;  %vm475_vm6 = vcmask 64512   ;;  %v3024_v26 = vld [vmem:[%s4534_s3 + $0x10] sm:$0xff] }
  0x17   : > { %3666 = vset.pattern.permute.xlu0 %v3732_v2  ;;  %3337 = vmatprep.subr.mxu1 %v3730_v0  ;;  %s3193_s13 = sshll.u32 %s380_s12, 4  ;;  %v780_v12 = vld [vmem:[%s4535_s4] sm:$0xff]  ;;  %v3026_v28 = vld [vmem:[%s4534_s3 + $0x18] sm:$0xff]  ;;  %v3082_v53 = vld [vmem:[%s4536_s5 + $0x10] sm:$0xff]  ;;  %s4496_s12 = scalar_lea.hbm %s4542_s11, %s3190_s22 }
  0x18   : > { %390 = vperm.xlu0 %3666, %v387_v1   ;;  %3339 = vmatprep.mubr.msk.f32.mxu1 %vm3731_vm0, %v3730_v0  ;;  %s383_s16 = scalar_lea.vmem %s4546_s0, %s3193_s13  ;;  %v3872_v13 = vshrl.u32 %v788_v11, 7  ;;  %v803_v14 = vand.u32 127, %v788_v11  ;;  %s3735_s13 = smov 125   ;;  %v468_v23 = vld [vmem:[%s4534_s3] sm:$0xff]  ;;  %v1037_v60 = vld [vmem:[%s4536_s5 + $0x8] sm:$0xff]  ;;  %v3092_v62 = vld [vmem:[%s4536_s5 + $0x30] sm:$0xff] }
  0x19   : > { %3667 = vset.pattern.permute.xlu1 %v3732_v2  ;;  %v386_v3 = vld [vmem:[%s383_s16 + $0x8] sm:$0xff]  ;;  %v385_v4 = vld [vmem:[%s383_s16] sm:$0xff]  ;;  %v3083_v2 = vld [vmem:[%s4536_s5 + $0x18] sm:$0xff]  ;;  %s3737_s21 = smov [#allocation2]  }
  0x1a   : > { %3331 = vmatpush3.msra.mxu0 %v386_v3  ;;  %v801_v15 = vadd.s32 96, %v3872_v13  ;;  %v3876_v16 = vmul.u32 2, %v803_v14  ;;  %v800_v17 = vadd.s32 88, %v3872_v13  ;;  %v799_v18 = vadd.s32 80, %v3872_v13  ;;  %v1036_v54 = vld [vmem:[%s4536_s5] sm:$0xff]  ;;  %v1386_v63 = vld [vmem:[%s4537_s6 + $0x8] sm:$0xff] }
  0x1b   : > { %3332 = vmatprep.subr.mxu0 %v3730_v0  ;;  %v798_v30 = vadd.s32 72, %v3872_v13  ;;  %v797_v31 = vadd.s32 64, %v3872_v13  ;;  %v796_v32 = vadd.s32 56, %v3872_v13  ;;  %v795_v33 = vadd.s32 48, %v3872_v13  ;;  %v1385_v61 = vld [vmem:[%s4537_s6] sm:$0xff]  ;;  %s3672_s15 = sshll.u32 %s3737_s21, 4  ;;  %s3673_s15 = int_to_ptr.vmem [resolvable:$false] %s3672_s15 }
  0x1c   : > { %3333 = vmatpush3.msra.mxu0 %v385_v4  ;;  %vm817_vm3 = vcmp.eq.s32.totalorder %v801_v15, %v3876_v16  ;;  %vm816_vm4 = vcmp.eq.s32.totalorder %v800_v17, %v3876_v16  ;;  %vm815_vm5 = vcmp.eq.s32.totalorder %v799_v18, %v3876_v16  ;;  %v3902_v25 = vadd.s32 1, %v3876_v16  ;;  %v3088_v3 = vld [vmem:[%s4536_s5 + $0x20] sm:$0xff]  ;;  %s3674_s16 = scalar_lea.vmem %s3673_s15, 32 }
  0x1d   : > { %3335 = vmatmul.mubr.msk.f32.vlgmr.msra.gmra.mxu0 %vm393_vm1, %v384_v5  ;;  %3357 = vmatprep.subr.mxu0 %v3730_v0  ;;  %v3040_v19 = vsel %vm817_vm3, 1.0, %v3730_v0  ;;  %vm814_vm10 = vcmp.eq.s32.totalorder %v798_v30, %v3876_v16  ;;  %vm813_vm12 = vcmp.eq.s32.totalorder %v797_v31, %v3876_v16  ;;  %vm812_vm14 = vcmp.eq.s32.totalorder %v796_v32, %v3876_v16 }
  0x1e   : > { %3383 = vmatprep.mubr.msk.f32.mxu0 %vm3731_vm0, %v3730_v0  ;;  %3358 = vmatpush3.msk.msra.mxu0 %vm848_vm2, %v3040_v19  ;;  %vm935_vm7 = vcmp.eq.s32.totalorder %v801_v15, %v3902_v25  ;;  %vm934_vm8 = vcmp.eq.s32.totalorder %v800_v17, %v3902_v25  ;;  %vm933_vm9 = vcmp.eq.s32.totalorder %v799_v18, %v3902_v25  ;;  %v3956_v34 = vadd.s32 40, %v3872_v13 }
  0x1f   : > { %3359 = vmatprep.subr.mxu0 %v3730_v0  ;;  %v3067_v29 = vsel %vm935_vm7, 1.0, %v3730_v0  ;;  %vm932_vm11 = vcmp.eq.s32.totalorder %v798_v30, %v3902_v25  ;;  %vm931_vm13 = vcmp.eq.s32.totalorder %v797_v31, %v3902_v25  ;;  %vm930_vm15 = vcmp.eq.s32.totalorder %v796_v32, %v3902_v25  ;;  %v1569_v30 = vld [vmem:[%s4538_s7 + $0x10] sm:$0x3f]  ;;  %v3114_v31 = vld [vmem:[%s4538_s7 + $0x28] sm:$0x3f] }
  0x20   : > { %3360 = vmatpush3.msk.msra.mxu0 %vm816_vm4, %v3736_v20  ;;  %vm811_vm1 = vcmp.eq.s32.totalorder %v795_v33, %v3876_v16  ;;  %vm810_vm3 = vcmp.eq.s32.totalorder %v3956_v34, %v3876_v16  ;;  %vm928_vm4 = vcmp.eq.s32.totalorder %v3956_v34, %v3902_v25  ;;  %v3967_v35 = vadd.s32 32, %v3872_v13  ;;  %v1568_v32 = vld [vmem:[%s4538_s7 + $0x8] sm:$0xff]  ;;  %v1567_v34 = vld [vmem:[%s4538_s7] sm:$0xff] }
  0x21   : > { %3361 = vmatprep.subr.mxu0 %v3730_v0  ;;  %v3984_v36 = vadd.s32 24, %v3872_v13  ;;  %v4001_v37 = vadd.s32 16, %v3872_v13  ;;  %v4018_v38 = vadd.s32 8, %v3872_v13 }
  0x22   : > { %3362 = vmatpush3.msk.msra.mxu0 %vm815_vm5, %v3736_v20  ;;  %vm809_vm5 = vcmp.eq.s32.totalorder %v3967_v35, %v3876_v16  ;;  %vm927_vm7 = vcmp.eq.s32.totalorder %v3967_v35, %v3902_v25  ;;  %v3112_v35 = vld [vmem:[%s4538_s7 + $0x18] sm:$0xff] }
  0x23   : > { %3363 = vmatprep.subr.mxu0 %v3730_v0 }
  0x24   : > { %3364 = vmatpush3.msk.msra.mxu0 %vm814_vm10, %v3736_v20  ;;  %vm807_vm10 = vcmp.eq.s32.totalorder %v4001_v37, %v3876_v16 }
  0x25   : > { %3365 = vmatprep.subr.mxu0 %v3730_v0 }
  0x26   : > { %3366 = vmatpush3.msk.msra.mxu0 %vm813_vm12, %v3736_v20  ;;  %vm806_vm12 = vcmp.eq.s32.totalorder %v4018_v38, %v3876_v16 }
  0x27   : > { %3367 = vmatprep.subr.mxu0 %v3730_v0 }
  0x28   : > { %3368 = vmatpush3.msk.msra.mxu0 %vm812_vm14, %v3736_v20  ;;  %vm805_vm14 = vcmp.eq.s32.totalorder %v3872_v13, %v3876_v16 }
  0x29   : > { %3369 = vmatprep.subr.mxu0 %v3730_v0 }
  0x2a   : > { %3370 = vmatpush3.msk.msra.mxu0 %vm811_vm1, %v3736_v20  ;;  %vm844_vm1 = vcmask 793600  }
  0x2b   : > { %3371 = vmatprep.subr.mxu0 %v3730_v0 }
  0x2c   : > { %3372 = vmatpush3.msk.msra.mxu0 %vm810_vm3, %v3736_v20 }
  0x2d   : > { %3373 = vmatprep.subr.mxu0 %v3730_v0 }
  0x2e   : > { %3374 = vmatpush3.msk.msra.mxu0 %vm809_vm5, %v3736_v20 }
  0x2f   : > { %3375 = vmatprep.subr.mxu0 %v3730_v0 }
  0x93   : > { %v391_v6 = vpop.permute.xlu0 %390 }
  0xdd   : > { %v463_v7 = vpop.f32.mrf.mxu0 }
  0xde   : > { %v464_v8 = vadd.f32 %v463_v7, %v391_v6  ;;  %v3089_v6 = vld [vmem:[%s4536_s5 + $0x28] sm:$0xff]  ;;  %v3093_v7 = vld [vmem:[%s4536_s5 + $0x38] sm:$0xff] }
  0xdf   : > { %v3336_v9 = vpop.f32.mrf.mxu0 }
  0xe0   : > { %v467_v10 = vmax.f32 %v464_v8, 0.0  ;;  %v3033_v8 = vsel %vm810_vm3, 1.0, %v3730_v0  ;;  %v3060_v9 = vsel %vm928_vm4, 1.0, %v3730_v0  ;;  %vm1579_vm3 = vcmask 1045504  }
  0xe2   : > { %624 = vrot.lane.b32.xlu1 %v467_v10, %s3733_s25  ;;  %472 = vrot.lane.b32.xlu0 %v467_v10, %s3734_s29 }
  0xe6   : > { %703 = vrot.lane.b32.xlu1 %v467_v10, %s3735_s13  ;;  %783 = vperm.xlu0 %3666, %v780_v12  }
 0x154   : > { %v473_v22 = vpop.permute.xlu0 %472  ;;  %v625_v24 = vpop.permute.xlu1 %624 }
 0x155   : > { %3338 = vmatpush3.msra.mxu1 %v473_v22 }
 0x156   : > { %3340 = vmatmul.mubr.msk.f32.vlgmr.msra.gmra.mxu1 %vm475_vm6, %v3021_v21  ;;  %3342 = vmatprep.subr.mxu1 %v3730_v0 }
 0x157   : > { %3343 = vmatpush3.msra.mxu1 %v467_v10  ;;  %3344 = vmatprep.mubr.msk.f32.mxu1 %vm3731_vm0, %v3730_v0 }
 0x158   : > { %3347 = vmatprep.subr.mxu1 %v3730_v0  ;;  %v704_v27 = vpop.permute.xlu1 %703 }
 0x15a   : > { %3345 = vmatmul.mubr.msk.f32.vlgmr.msra.gmra.mxu1 %vm475_vm6, %v468_v23 }
 0x15b   : > { %3348 = vmatpush3.msra.mxu1 %v625_v24  ;;  %3349 = vmatprep.mubr.msk.f32.mxu1 %vm3731_vm0, %v3730_v0 }
 0x15c   : > { %3352 = vmatprep.subr.mxu1 %v3730_v0 }
 0x15e   : > { %3350 = vmatmul.mubr.msk.f32.vlgmr.msra.gmra.mxu1 %vm475_vm6, %v3024_v26 }
 0x15f   : > { %3353 = vmatpush3.msra.mxu1 %v704_v27  ;;  %3354 = vmatprep.mubr.msk.f32.mxu1 %vm3731_vm0, %v3730_v0 }
 0x160   : > { %3386 = vmatprep.subr.mxu1 %v3730_v0 }
 0x161   : > { %v784_v49 = vpop.permute.xlu0 %783 }
 0x162   : > { %3355 = vmatmul.mubr.msk.f32.vlgmr.msra.gmra.mxu1 %vm475_vm6, %v3026_v28 }
 0x163   : > { %3387 = vmatpush3.msk.msra.mxu1 %vm848_vm2, %v3067_v29  ;;  %3412 = vmatprep.mubr.msk.f32.mxu1 %vm3731_vm0, %v3730_v0  ;;  %vm929_vm2 = vcmp.eq.s32.totalorder %v795_v33, %v3902_v25  ;;  %v3113_v33 = vld [vmem:[%s4538_s7 + $0x20] sm:$0xff] }
 0x164   : > { %3388 = vmatprep.subr.mxu1 %v3730_v0 }
 0x165   : > { %3389 = vmatpush3.msk.msra.mxu1 %vm934_vm8, %v3736_v20  ;;  %vm808_vm8 = vcmp.eq.s32.totalorder %v3984_v36, %v3876_v16 }
 0x166   : > { %3390 = vmatprep.subr.mxu1 %v3730_v0  ;;  %3376 = vmatpush3.msk.msra.mxu0 %vm808_vm8, %v3736_v20 }
 0x167   : > { %3391 = vmatpush3.msk.msra.mxu1 %vm933_vm9, %v3736_v20  ;;  %vm926_vm9 = vcmp.eq.s32.totalorder %v3984_v36, %v3902_v25  ;;  %3377 = vmatprep.subr.mxu0 %v3730_v0 }
 0x168   : > { %3392 = vmatprep.subr.mxu1 %v3730_v0  ;;  %3378 = vmatpush3.msk.msra.mxu0 %vm807_vm10, %v3736_v20 }
 0x169   : > { %3393 = vmatpush3.msk.msra.mxu1 %vm932_vm11, %v3736_v20  ;;  %vm925_vm11 = vcmp.eq.s32.totalorder %v4001_v37, %v3902_v25  ;;  %3379 = vmatprep.subr.mxu0 %v3730_v0 }
 0x16a   : > { %3394 = vmatprep.subr.mxu1 %v3730_v0  ;;  %3380 = vmatpush3.msk.msra.mxu0 %vm806_vm12, %v3736_v20 }
 0x16b   : > { %3395 = vmatpush3.msk.msra.mxu1 %vm931_vm13, %v3736_v20  ;;  %vm924_vm13 = vcmp.eq.s32.totalorder %v4018_v38, %v3902_v25  ;;  %3381 = vmatprep.subr.mxu0 %v3730_v0 }
 0x16c   : > { %3396 = vmatprep.subr.mxu1 %v3730_v0  ;;  %3382 = vmatpush3.msk.msra.mxu0 %vm805_vm14, %v3736_v20 }
 0x16d   : > { %3397 = vmatpush3.msk.msra.mxu1 %vm930_vm15, %v3736_v20  ;;  %vm923_vm15 = vcmp.eq.s32.totalorder %v3872_v13, %v3902_v25 }
 0x16e   : > { %3398 = vmatprep.subr.mxu1 %v3730_v0 }
 0x16f   : > { %3399 = vmatpush3.msk.msra.mxu1 %vm929_vm2, %v3736_v20  ;;  %vm1408_vm2 = vcmask 1044480  }
 0x170   : > { %3400 = vmatprep.subr.mxu1 %v3730_v0 }
 0x171   : > { %3401 = vmatpush3.msk.msra.mxu1 %vm928_vm4, %v3736_v20  ;;  %vm1576_vm4 = vcmask 179200  }
 0x172   : > { %3402 = vmatprep.subr.mxu1 %v3730_v0 }
 0x173   : > { %3403 = vmatpush3.msk.msra.mxu1 %vm927_vm7, %v3736_v20 }
 0x174   : > { %3404 = vmatprep.subr.mxu1 %v3730_v0 }
 0x175   : > { %3405 = vmatpush3.msk.msra.mxu1 %vm926_vm9, %v3736_v20 }
 0x176   : > { %3406 = vmatprep.subr.mxu1 %v3730_v0 }
 0x177   : > { %3407 = vmatpush3.msk.msra.mxu1 %vm925_vm11, %v3736_v20 }
 0x178   : > { %3408 = vmatprep.subr.mxu1 %v3730_v0 }
 0x179   : > { %3409 = vmatpush3.msk.msra.mxu1 %vm924_vm13, %v3736_v20 }
 0x17a   : > { %3410 = vmatprep.subr.mxu1 %v3730_v0 }
 0x17b   : > { %3411 = vmatpush3.msk.msra.mxu1 %vm923_vm15, %v3736_v20 }
 0x216   : > { %v545_v39 = vpop.f32.mrf.mxu1 }
 0x218   : > { %v3341_v40 = vpop.f32.mrf.mxu1 }
 0x21a   : > { %v618_v41 = vpop.f32.mrf.mxu1 }
 0x21b   : > { %v619_v44 = vadd.f32 %v618_v41, %v545_v39  ;;  %v3126_v41 = vld [vmem:[%s4538_s7 + $0x58] sm:$0x3f] }
 0x21c   : > { %v3346_v42 = vpop.f32.mrf.mxu1 }
 0x21e   : > { %v696_v43 = vpop.f32.mrf.mxu1 }
 0x21f   : > { %v700_v46 = vadd.f32 %v696_v43, %v619_v44  ;;  %v3121_v43 = vld [vmem:[%s4538_s7 + $0x40] sm:$0x3f]  ;;  %v3125_v44 = vld [vmem:[%s4538_s7 + $0x50] sm:$0xff] }
 0x220   : > { %v3351_v45 = vpop.f32.mrf.mxu1 }
 0x221   : > { %v3120_v45 = vld [vmem:[%s4538_s7 + $0x38] sm:$0xff] }
 0x222   : > { %v775_v47 = vpop.f32.mrf.mxu1 }
 0x223   : > { %v779_v48 = vadd.f32 %v775_v47, %v700_v46  ;;  %v3124_v46 = vld [vmem:[%s4538_s7 + $0x48] sm:$0xff] }
 0x224   : > { %v3356_v50 = vpop.f32.mrf.mxu1 }
 0x225   : > { %v786_v51 = vadd.f32 %v784_v49, %v779_v48  ;;  %v3119_v48 = vld [vmem:[%s4538_s7 + $0x30] sm:$0xff]  ;;  %v3136_v49 = vld [vmem:[%s4538_s7 + $0x88] sm:$0x3f] }
 0x227   : > { %v787_v52 = vmax.f32 %v786_v51, 0.0  ;;  %v3131_v51 = vld [vmem:[%s4538_s7 + $0x70] sm:$0x3f] }
 0x229   : > { %3384 = vmatmul.mubr.msk.f32.vlgmr.msra.gmra.mxu0 %vm844_vm1, %v787_v52  ;;  %3413 = vmatmul.mubr.msk.f32.vlgmr.msra.gmra.mxu1 %vm844_vm1, %v787_v52  ;;  %v3135_v52 = vld [vmem:[%s4538_s7 + $0x80] sm:$0xff] }
 0x22a   : > { %3417 = vmatprep.mubr.msk.f32.mxu0 %vm475_vm6, %v3082_v53  ;;  %3422 = vmatprep.mubr.msk.f32.mxu1 %vm475_vm6, %v1036_v54  ;;  %v3130_v53 = vld [vmem:[%s4538_s7 + $0x68] sm:$0xff]  ;;  %v3134_v54 = vld [vmem:[%s4538_s7 + $0x78] sm:$0xff] }
 0x2e9   : > { %v918_v55 = vpop.f32.mrf.mxu0  ;;  %v1031_v56 = vpop.f32.mrf.mxu1 }
 0x2ea   : > { %v1035_v57 = vmax.f32 %v918_v55, %v1031_v56  ;;  %v3129_v56 = vld [vmem:[%s4538_s7 + $0x60] sm:$0xff] }
 0x2eb   : > { %v3385_v58 = vpop.f32.mrf.mxu0  ;;  %v3414_v59 = vpop.f32.mrf.mxu1 }
 0x2ec   : > { %1210 = vrot.lane.b32.xlu0 %v1035_v57, %s3733_s25  ;;  %1042 = vrot.lane.b32.xlu1 %v1035_v57, %s3734_s29  ;;  %v3141_v59 = vld [vmem:[%s4538_s7 + $0xa0] sm:$0x3f] }
 0x2ed   : > { %3420 = vmatprep.subr.mxu1 %v1035_v57 }
 0x2ee   : > { %3421 = vmatpush3.msra.mxu1 %v1035_v57 }
 0x2ef   : > { %3423 = vmatmul.mubr.msk.f32.vlgmr.msra.gmra.mxu1 %vm475_vm6, %v1037_v60  ;;  %v3145_v60 = vld [vmem:[%s4538_s7 + $0xb0] sm:$0xff] }
 0x2f0   : > { %1389 = vperm.xlu0 %3666, %v1385_v61   ;;  %1299 = vrot.lane.b32.xlu1 %v1035_v57, %s3735_s13  ;;  %v3146_v57 = vld [vmem:[%s4538_s7 + $0xb8] sm:$0x3f]  ;;  %s377_s13 = sand.u32 1, %s3720_s18  }
 0x2f1   : > { %3432 = vmatprep.mubr.msk.f32.mxu1 %vm475_vm6, %v3092_v62  ;;  %v3140_v61 = vld [vmem:[%s4538_s7 + $0x98] sm:$0xff]  ;;  %v3144_v62 = vld [vmem:[%s4538_s7 + $0xa8] sm:$0xff]  ;;  %s378_s25 = scalar_lea.vmem [#allocation2], %s377_s13  ;;  %s2947_s14 = scalar_lea.sflag [#allocation3], %s377_s13 }
 0x2f2   : > { %s2959_s29 = sshll.u32 %s378_s25, 4  ;;  %s2960_s29 = int_to_ptr.vmem [resolvable:$true] %s2959_s29 }
 0x2f3   : > { %s3668_s0 = scalar_lea.vmem %s2960_s29, 16  ;;  %p3675_p0 = scmp.lt.s32.totalorder %s2960_s29, %s3673_s15 }
 0x2f4   : > { %1394 = vperm.xlu1 %3667, %v1386_v63   ;;  %p3669_p11 = scmp.ne.s32.totalorder %s2960_s29, %s3668_s0  ;;  %p3676_p1 = scmp.lt.s32.totalorder %s3674_s16, %s3668_s0 }
 0x2f6   : > { %p3670_p12 = pnand %p3669_p11, %p3836_p5  ;;  %p3677_p2 = por %p3676_p1, %p3675_p0 }
 0x2f8   : > { %p3671_p13 = pneg %p3670_p12 }
 0x2fa   : > { %p3678_p3 = pnand %p3677_p2, %p3671_p13 }
 0x35e   : > { %v1043_v1 = vpop.permute.xlu1 %1042  ;;  %v1211_v4 = vpop.permute.xlu0 %1210 }
 0x35f   : > { %3415 = vmatprep.subr.mxu0 %v1043_v1 }
 0x360   : > { %3416 = vmatpush3.msra.mxu0 %v1043_v1  ;;  %v3139_v1 = vld [vmem:[%s4538_s7 + $0x90] sm:$0xff] }
 0x361   : > { %3418 = vmatmul.mubr.msk.f32.vlgmr.msra.gmra.mxu0 %vm475_vm6, %v3083_v2  ;;  %3425 = vmatprep.subr.mxu0 %v1211_v4  ;;  %v3156_v2 = vld [vmem:[%s4538_s7 + $0xe8] sm:$0x3f] }
 0x362   : > { %3426 = vmatpush3.msra.mxu0 %v1211_v4  ;;  %v1300_v5 = vpop.permute.xlu1 %1299  ;;  %3427 = vmatprep.mubr.msk.f32.mxu0 %vm475_vm6, %v3088_v3  ;;  %v3151_v4 = vld [vmem:[%s4538_s7 + $0xd0] sm:$0x3f] }
 0x363   : > { %3430 = vmatprep.subr.mxu1 %v1300_v5  ;;  %3435 = vmatprep.subr.msk.mxu0 %vm1408_vm2, %v3033_v8 }
 0x364   : > { %3431 = vmatpush3.msra.mxu1 %v1300_v5 }
 0x365   : > { %3428 = vmatmul.mubr.msk.f32.vlgmr.msra.gmra.mxu0 %vm475_vm6, %v3089_v6  ;;  %3433 = vmatmul.mubr.msk.f32.vlgmr.msra.gmra.mxu1 %vm475_vm6, %v3093_v7  ;;  %vm1401_vm6 = vcmask 367616   ;;  %v3155_v6 = vld [vmem:[%s4538_s7 + $0xe0] sm:$0xff]  ;;  %v3150_v7 = vld [vmem:[%s4538_s7 + $0xc8] sm:$0xff] }
 0x366   : > { %3450 = vmatprep.subr.msk.mxu1 %vm1408_vm2, %v3060_v9  ;;  %3436 = vmatpush3.msk.msra.mxu0 %vm1408_vm2, %v3033_v8  ;;  %v3154_v8 = vld [vmem:[%s4538_s7 + $0xd8] sm:$0xff] }
 0x367   : > { %3451 = vmatpush3.msk.msra.mxu1 %vm1408_vm2, %v3060_v9  ;;  %3437 = vmatprep.subr.msk.mxu0 %vm809_vm5, %v3736_v20 }
 0x368   : > { %3452 = vmatprep.subr.msk.mxu1 %vm927_vm7, %v3736_v20  ;;  %3438 = vmatpush3.msk.msra.mxu0 %vm809_vm5, %v3736_v20  ;;  %vm2944_vm5 = vcmask 16384  }
 0x369   : > { %3453 = vmatpush3.msk.msra.mxu1 %vm927_vm7, %v3736_v20  ;;  %3439 = vmatprep.subr.msk.mxu0 %vm808_vm8, %v3736_v20 }
 0x36a   : > { %3454 = vmatprep.subr.msk.mxu1 %vm926_vm9, %v3736_v20  ;;  %3440 = vmatpush3.msk.msra.mxu0 %vm808_vm8, %v3736_v20 }
 0x36b   : > { %3455 = vmatpush3.msk.msra.mxu1 %vm926_vm9, %v3736_v20  ;;  %3441 = vmatprep.subr.msk.mxu0 %vm807_vm10, %v3736_v20 }
 0x36c   : > { %3456 = vmatprep.subr.msk.mxu1 %vm925_vm11, %v3736_v20  ;;  %3442 = vmatpush3.msk.msra.mxu0 %vm807_vm10, %v3736_v20 }
 0x36d   : > { %3457 = vmatpush3.msk.msra.mxu1 %vm925_vm11, %v3736_v20  ;;  %3443 = vmatprep.subr.msk.mxu0 %vm806_vm12, %v3736_v20 }
 0x36e   : > { %3458 = vmatprep.subr.msk.mxu1 %vm924_vm13, %v3736_v20  ;;  %3444 = vmatpush3.msk.msra.mxu0 %vm806_vm12, %v3736_v20 }
 0x36f   : > { %3459 = vmatpush3.msk.msra.mxu1 %vm924_vm13, %v3736_v20  ;;  %3445 = vmatprep.subr.msk.mxu0 %vm805_vm14, %v3736_v20  ;;  %v1395_v24 = vpop.permute.xlu1 %1394 }
 0x370   : > { %3460 = vmatprep.subr.msk.mxu1 %vm923_vm15, %v3736_v20  ;;  %3446 = vmatpush3.msk.msra.mxu0 %vm805_vm14, %v3736_v20 }
 0x371   : > { %3461 = vmatpush3.msk.msra.mxu1 %vm923_vm15, %v3736_v20  ;;  %3465 = vmatprep.subr.mxu0 %v3730_v0  ;;  %v1390_v20 = vpop.permute.xlu0 %1389 }
 0x372   : > { %3474 = vmatprep.subr.mxu1 %v3730_v0 }
 0x3af   : > { %v3424_v10 = vpop.f32.mrf.mxu1 }
 0x3b1   : > { %v1198_v12 = vpop.f32.mrf.mxu1 }
 0x421   : > { %v3419_v11 = vpop.f32.mrf.mxu0 }
 0x422   : > { %v1204_v15 = vadd.f32 %v3424_v10, %v3419_v11  ;;  %v3149_v10 = vld [vmem:[%s4538_s7 + $0xc0] sm:$0xff]  ;;  %v3166_v11 = vld [vmem:[%s4538_s7 + $0x118] sm:$0x3f] }
 0x423   : > { %v1117_v14 = vpop.f32.mrf.mxu0 }
 0x424   : > { %v1199_v19 = vadd.f32 %v1198_v12, %v1117_v14  ;;  %v3161_v12 = vld [vmem:[%s4538_s7 + $0x100] sm:$0x3f]  ;;  %v3165_v14 = vld [vmem:[%s4538_s7 + $0x110] sm:$0xff] }
 0x425   : > { %v3429_v17 = vpop.f32.mrf.mxu0  ;;  %v3434_v18 = vpop.f32.mrf.mxu1 }
 0x426   : > { %v1295_v21 = vadd.f32 %v3429_v17, %v1204_v15  ;;  %v3160_v15 = vld [vmem:[%s4538_s7 + $0xf8] sm:$0xff]  ;;  %v3164_v17 = vld [vmem:[%s4538_s7 + $0x108] sm:$0xff] }
 0x427   : > { %v1285_v16 = vpop.f32.mrf.mxu0  ;;  %v1374_v26 = vpop.f32.mrf.mxu1 }
 0x428   : > { %v1294_v22 = vadd.f32 %v1285_v16, %v1199_v19  ;;  %v1384_v23 = vadd.f32 %v3434_v18, %v1295_v21  ;;  %v3159_v19 = vld [vmem:[%s4538_s7 + $0xf0] sm:$0xff]  ;;  %v3176_v21 = vld [vmem:[%s4538_s7 + $0x148] sm:$0x3f] }
 0x42a   : > { %v1383_v13 = vadd.f32 %v1374_v26, %v1294_v22  ;;  %v1398_v25 = vadd.f32 %v1395_v24, %v1384_v23  ;;  %v3171_v22 = vld [vmem:[%s4538_s7 + $0x130] sm:$0x3f]  ;;  %v3175_v23 = vld [vmem:[%s4538_s7 + $0x140] sm:$0xff]  ;;  %v3170_v24 = vld [vmem:[%s4538_s7 + $0x128] sm:$0xff] }
 0x42b   : > { %v3174_v26 = vld [vmem:[%s4538_s7 + $0x138] sm:$0xff] }
 0x42c   : > { %v1397_v27 = vadd.f32 %v1390_v20, %v1383_v13  ;;  %v1400_v29 = vmax.f32 %v1398_v25, 0.0  ;;  %v3169_v20 = vld [vmem:[%s4538_s7 + $0x120] sm:$0xff]  ;;  %v3186_v25 = vld [vmem:[%s4538_s7 + $0x178] sm:$0x3f] }
 0x42e   : > { %v1399_v28 = vmax.f32 %v1397_v27, 0.0 }
 0x430   : > { %3447 = vmatprep.mubr.msk.f32.mxu0 %vm1401_vm6, %v1399_v28  ;;  %3462 = vmatprep.mubr.msk.f32.mxu1 %vm1401_vm6, %v1399_v28  ;;  %v3181_v28 = vld [vmem:[%s4538_s7 + $0x160] sm:$0x3f] }
 0x431   : > { %3448 = vmatmul.mubr.msk.f32.vlgmr.msra.gmra.mxu0 %vm1401_vm6, %v1400_v29  ;;  %3463 = vmatmul.mubr.msk.f32.vlgmr.msra.gmra.mxu1 %vm1401_vm6, %v1400_v29  ;;  %v3185_v29 = vld [vmem:[%s4538_s7 + $0x170] sm:$0xff] }
 0x432   : > { %3475 = vmatpush3.msk.msra.mxu1 %vm1579_vm3, %v1569_v30  ;;  %3480 = vmatprep.mubr.msk.f32.mxu1 %vm3731_vm0, %v3730_v0  ;;  %v3180_v30 = vld [vmem:[%s4538_s7 + $0x158] sm:$0xff] }
 0x433   : > { %3476 = vmatprep.subr.mxu1 %v3730_v0  ;;  %3471 = vmatprep.mubr.msk.f32.mxu0 %vm3731_vm0, %v3730_v0 }
 0x434   : > { %3466 = vmatpush3.msk.msra.mxu0 %vm1579_vm3, %v3114_v31  ;;  %3477 = vmatpush3.msra.mxu1 %v1568_v32  ;;  %v3184_v31 = vld [vmem:[%s4538_s7 + $0x168] sm:$0xff] }
 0x435   : > { %3467 = vmatprep.subr.mxu0 %v3730_v0  ;;  %3478 = vmatprep.subr.mxu1 %v3730_v0 }
 0x436   : > { %3468 = vmatpush3.msra.mxu0 %v3113_v33  ;;  %3479 = vmatpush3.msra.mxu1 %v1567_v34  ;;  %v3179_v33 = vld [vmem:[%s4538_s7 + $0x150] sm:$0xff] }
 0x437   : > { %3469 = vmatprep.subr.mxu0 %v3730_v0  ;;  %3492 = vmatprep.subr.mxu1 %v3730_v0 }
 0x438   : > { %3470 = vmatpush3.msra.mxu0 %v3112_v35  ;;  %v2868_v35 = vld [vmem:[%s4540_s9 + $0x18] sm:$0xff] }
 0x439   : > { %3483 = vmatprep.subr.mxu0 %v3730_v0 }
 0x4f1   : > { %v4217_v36 = vpop.f32.mrf.mxu0  ;;  %v4219_v37 = vpop.f32.mrf.mxu1 }
 0x4f2   : > { %v4333_v5 = vmax.f32 %v4217_v36, %v4219_v37  ;;  %v2867_v36 = vld [vmem:[%s4540_s9 + $0x10] sm:$0xff]  ;;  %v2866_v37 = vld [vmem:[%s4540_s9 + $0x8] sm:$0xff] }
 0x4f3   : > { %v1478_v38 = vpop.f32.mrf.mxu0  ;;  %v1556_v39 = vpop.f32.mrf.mxu1 }
 0x4f4   : > { %v4221_v40 = vmax.f32 %v1478_v38, %v1556_v39  ;;  %v2299_v9 = vrot.slane %v4333_v5, 1  ;;  %v2461_v18 = vrot.slane %v4333_v5, 3  ;;  %v2380_v16 = vrot.slane %v4333_v5, 2  ;;  %v2865_v38 = vld [vmem:[%s4540_s9] sm:$0xff] }
 0x4f5   : > { %v2623_v13 = vrot.slane %v4333_v5, 5  ;;  %v2542_v27 = vrot.slane %v4333_v5, 4  ;;  %v2785_v32 = vrot.slane %v4333_v5, 7  ;;  %v2704_v34 = vrot.slane %v4333_v5, 6 }
 0x4f6   : > { %3481 = vmatmul.mubr.msk.f32.vlgmr.msra.gmra.mxu1 %vm1576_vm4, %v4221_v40  ;;  %v1575_v42 = vrot.slane %v4221_v40, 1  ;;  %v1813_v47 = vrot.slane %v4221_v40, 3  ;;  %v1732_v50 = vrot.slane %v4221_v40, 2  ;;  %v1975_v55 = vrot.slane %v4221_v40, 5 }
 0x4f7   : > { %3493 = vmatpush3.msk.msra.mxu1 %vm1579_vm3, %v3126_v41  ;;  %3498 = vmatprep.mubr.msk.f32.mxu1 %vm3731_vm0, %v3730_v0  ;;  %v1894_v58 = vrot.slane %v4221_v40, 4  ;;  %v2137_v63 = vrot.slane %v4221_v40, 7  ;;  %v2056_v3 = vrot.slane %v4221_v40, 6 }
 0x4f8   : > { %3494 = vmatprep.subr.mxu1 %v3730_v0  ;;  %3472 = vmatmul.mubr.msk.f32.vlgmr.msra.gmra.mxu0 %vm1576_vm4, %v1575_v42 }
 0x4f9   : > { %3484 = vmatpush3.msk.msra.mxu0 %vm1579_vm3, %v3121_v43  ;;  %3495 = vmatpush3.msra.mxu1 %v3125_v44 }
 0x4fa   : > { %3485 = vmatprep.subr.mxu0 %v3730_v0  ;;  %3496 = vmatprep.subr.mxu1 %v3730_v0 }
 0x4fb   : > { %3486 = vmatpush3.msra.mxu0 %v3120_v45  ;;  %3497 = vmatpush3.msra.mxu1 %v3124_v46 }
 0x4fc   : > { %3487 = vmatprep.subr.mxu0 %v3730_v0  ;;  %3499 = vmatmul.mubr.msk.f32.vlgmr.msra.gmra.mxu1 %vm1576_vm4, %v1813_v47 }
 0x4fd   : > { %3510 = vmatprep.subr.mxu1 %v3730_v0  ;;  %3488 = vmatpush3.msra.mxu0 %v3119_v48 }
 0x4fe   : > { %3489 = vmatprep.mubr.msk.f32.mxu0 %vm3731_vm0, %v3730_v0  ;;  %3511 = vmatpush3.msk.msra.mxu1 %vm1579_vm3, %v3136_v49 }
 0x4ff   : > { %3490 = vmatmul.mubr.msk.f32.vlgmr.msra.gmra.mxu0 %vm1576_vm4, %v1732_v50  ;;  %3501 = vmatprep.subr.mxu0 %v3730_v0 }
 0x500   : > { %3512 = vmatprep.subr.mxu1 %v3730_v0  ;;  %3502 = vmatpush3.msk.msra.mxu0 %vm1579_vm3, %v3131_v51 }
 0x501   : > { %3513 = vmatpush3.msra.mxu1 %v3135_v52  ;;  %3503 = vmatprep.subr.mxu0 %v3730_v0 }
 0x502   : > { %3514 = vmatprep.subr.mxu1 %v3730_v0  ;;  %3504 = vmatpush3.msra.mxu0 %v3130_v53 }
 0x503   : > { %3515 = vmatpush3.msra.mxu1 %v3134_v54  ;;  %3516 = vmatprep.mubr.msk.f32.mxu1 %vm3731_vm0, %v3730_v0 }
 0x504   : > { %3505 = vmatprep.subr.mxu0 %v3730_v0  ;;  %3517 = vmatmul.mubr.msk.f32.vlgmr.msra.gmra.mxu1 %vm1576_vm4, %v1975_v55 }
 0x505   : > { %3528 = vmatprep.subr.mxu1 %v3730_v0  ;;  %3506 = vmatpush3.msra.mxu0 %v3129_v56 }
 0x506   : > { %3507 = vmatprep.mubr.msk.f32.mxu0 %vm3731_vm0, %v3730_v0  ;;  %3529 = vmatpush3.msk.msra.mxu1 %vm1579_vm3, %v3146_v57 }
 0x507   : > { %3508 = vmatmul.mubr.msk.f32.vlgmr.msra.gmra.mxu0 %vm1576_vm4, %v1894_v58  ;;  %3519 = vmatprep.subr.mxu0 %v3730_v0 }
 0x508   : > { %3530 = vmatprep.subr.mxu1 %v3730_v0  ;;  %3520 = vmatpush3.msk.msra.mxu0 %vm1579_vm3, %v3141_v59 }
 0x509   : > { %3531 = vmatpush3.msra.mxu1 %v3145_v60  ;;  %3521 = vmatprep.subr.mxu0 %v3730_v0 }
 0x50a   : > { %3532 = vmatprep.subr.mxu1 %v3730_v0  ;;  %3522 = vmatpush3.msra.mxu0 %v3140_v61 }
 0x50b   : > { %3533 = vmatpush3.msra.mxu1 %v3144_v62  ;;  %3534 = vmatprep.mubr.msk.f32.mxu1 %vm3731_vm0, %v3730_v0 }
 0x50c   : > { %3523 = vmatprep.subr.mxu0 %v3730_v0  ;;  %3535 = vmatmul.mubr.msk.f32.vlgmr.msra.gmra.mxu1 %vm1576_vm4, %v2137_v63 }
 0x50d   : > { %3546 = vmatprep.subr.mxu1 %v3730_v0  ;;  %3524 = vmatpush3.msra.mxu0 %v3139_v1 }
 0x50e   : > { %3525 = vmatprep.mubr.msk.f32.mxu0 %vm3731_vm0, %v3730_v0  ;;  %3547 = vmatpush3.msk.msra.mxu1 %vm1579_vm3, %v3156_v2 }
 0x50f   : > { %3526 = vmatmul.mubr.msk.f32.vlgmr.msra.gmra.mxu0 %vm1576_vm4, %v2056_v3  ;;  %3537 = vmatprep.subr.mxu0 %v3730_v0 }
 0x510   : > { %3548 = vmatprep.subr.mxu1 %v3730_v0  ;;  %3538 = vmatpush3.msk.msra.mxu0 %vm1579_vm3, %v3151_v4 }
 0x511   : > { %3549 = vmatpush3.msra.mxu1 %v3155_v6  ;;  %3539 = vmatprep.subr.mxu0 %v3730_v0 }
 0x512   : > { %3550 = vmatprep.subr.mxu1 %v3730_v0  ;;  %3540 = vmatpush3.msra.mxu0 %v3150_v7 }
 0x513   : > { %3551 = vmatpush3.msra.mxu1 %v3154_v8  ;;  %3552 = vmatprep.mubr.msk.f32.mxu1 %vm3731_vm0, %v3730_v0 }
 0x514   : > { %3541 = vmatprep.subr.mxu0 %v3730_v0  ;;  %3553 = vmatmul.mubr.msk.f32.vlgmr.msra.gmra.mxu1 %vm1576_vm4, %v2299_v9 }
 0x515   : > { %3564 = vmatprep.subr.mxu1 %v3730_v0  ;;  %3542 = vmatpush3.msra.mxu0 %v3149_v10 }
 0x516   : > { %3543 = vmatprep.mubr.msk.f32.mxu0 %vm3731_vm0, %v3730_v0  ;;  %3565 = vmatpush3.msk.msra.mxu1 %vm1579_vm3, %v3166_v11 }
 0x517   : > { %3544 = vmatmul.mubr.msk.f32.vlgmr.msra.gmra.mxu0 %vm1576_vm4, %v4333_v5  ;;  %3555 = vmatprep.subr.mxu0 %v3730_v0 }
 0x518   : > { %3566 = vmatprep.subr.mxu1 %v3730_v0  ;;  %3556 = vmatpush3.msk.msra.mxu0 %vm1579_vm3, %v3161_v12 }
 0x519   : > { %3567 = vmatpush3.msra.mxu1 %v3165_v14  ;;  %3557 = vmatprep.subr.mxu0 %v3730_v0 }
 0x51a   : > { %3568 = vmatprep.subr.mxu1 %v3730_v0  ;;  %3558 = vmatpush3.msra.mxu0 %v3160_v15 }
 0x51b   : > { %3569 = vmatpush3.msra.mxu1 %v3164_v17  ;;  %3570 = vmatprep.mubr.msk.f32.mxu1 %vm3731_vm0, %v3730_v0 }
 0x51c   : > { %3559 = vmatprep.subr.mxu0 %v3730_v0  ;;  %3571 = vmatmul.mubr.msk.f32.vlgmr.msra.gmra.mxu1 %vm1576_vm4, %v2461_v18 }
 0x51d   : > { %3582 = vmatprep.subr.mxu1 %v3730_v0  ;;  %3560 = vmatpush3.msra.mxu0 %v3159_v19 }
 0x51e   : > { %3561 = vmatprep.mubr.msk.f32.mxu0 %vm3731_vm0, %v3730_v0  ;;  %3583 = vmatpush3.msk.msra.mxu1 %vm1579_vm3, %v3176_v21 }
 0x51f   : > { %3562 = vmatmul.mubr.msk.f32.vlgmr.msra.gmra.mxu0 %vm1576_vm4, %v2380_v16  ;;  %3573 = vmatprep.subr.mxu0 %v3730_v0 }
 0x520   : > { %3584 = vmatprep.subr.mxu1 %v3730_v0  ;;  %3574 = vmatpush3.msk.msra.mxu0 %vm1579_vm3, %v3171_v22  ;;  %v2862_v22 = vld [vmem:[%s4539_s8] sm:$0x1] }
 0x521   : > { %3585 = vmatpush3.msra.mxu1 %v3175_v23  ;;  %3575 = vmatprep.subr.mxu0 %v3730_v0 }
 0x522   : > { %3586 = vmatprep.subr.mxu1 %v3730_v0  ;;  %3576 = vmatpush3.msra.mxu0 %v3170_v24 }
 0x523   : > { %3587 = vmatpush3.msra.mxu1 %v3174_v26  ;;  %3588 = vmatprep.mubr.msk.f32.mxu1 %vm3731_vm0, %v3730_v0 }
 0x524   : > { %3577 = vmatprep.subr.mxu0 %v3730_v0  ;;  %3589 = vmatmul.mubr.msk.f32.vlgmr.msra.gmra.mxu1 %vm1576_vm4, %v2623_v13 }
 0x525   : > { %3600 = vmatprep.subr.mxu1 %v3730_v0  ;;  %3578 = vmatpush3.msra.mxu0 %v3169_v20  ;;  %v2869_v20 = vld [vmem:[%s4541_s10] sm:$0x1] }
 0x526   : > { %3579 = vmatprep.mubr.msk.f32.mxu0 %vm3731_vm0, %v3730_v0  ;;  %3601 = vmatpush3.msk.msra.mxu1 %vm1579_vm3, %v3186_v25 }
 0x527   : > { %3580 = vmatmul.mubr.msk.f32.vlgmr.msra.gmra.mxu0 %vm1576_vm4, %v2542_v27  ;;  %3591 = vmatprep.subr.mxu0 %v3730_v0 }
 0x528   : > { %3602 = vmatprep.subr.mxu1 %v3730_v0  ;;  %3592 = vmatpush3.msk.msra.mxu0 %vm1579_vm3, %v3181_v28 }
 0x529   : > { %3603 = vmatpush3.msra.mxu1 %v3185_v29  ;;  %3593 = vmatprep.subr.mxu0 %v3730_v0 }
 0x52a   : > { %3604 = vmatprep.subr.mxu1 %v3730_v0  ;;  %3594 = vmatpush3.msra.mxu0 %v3180_v30 }
 0x52b   : > { %3605 = vmatpush3.msra.mxu1 %v3184_v31  ;;  %3606 = vmatprep.mubr.msk.f32.mxu1 %vm3731_vm0, %v3730_v0 }
 0x52c   : > { %3595 = vmatprep.subr.mxu0 %v3730_v0  ;;  %3607 = vmatmul.mubr.msk.f32.vlgmr.msra.gmra.mxu1 %vm1576_vm4, %v2785_v32 }
 0x52d   : > { %3596 = vmatpush3.msra.mxu0 %v3179_v33  ;;  %3597 = vmatprep.mubr.msk.f32.mxu0 %vm3731_vm0, %v3730_v0 }
 0x52e   : > { %3598 = vmatmul.mubr.msk.f32.vlgmr.msra.gmra.mxu0 %vm1576_vm4, %v2704_v34  ;;  %3609 = vmatprep.subr.mxu0 %v3730_v0 }
 0x52f   : > { %3617 = vmatprep.mubr.msk.f32.mxu0 %vm3731_vm0, %v3730_v0  ;;  %3610 = vmatpush3.msra.mxu0 %v2868_v35  ;;  %vm2870_vm0 = vcmask 261120  }
 0x530   : > { %3611 = vmatprep.subr.mxu0 %v3730_v0 }
 0x531   : > { %3612 = vmatpush3.msra.mxu0 %v2867_v36 }
 0x532   : > { %3613 = vmatprep.subr.mxu0 %v3730_v0 }
 0x533   : > { %3614 = vmatpush3.msra.mxu0 %v2866_v37 }
 0x534   : > { %3615 = vmatprep.subr.mxu0 %v3730_v0 }
 0x535   : > { %3616 = vmatpush3.msra.mxu0 %v2865_v38 }
 0x5b6   : > { %v1724_v39 = vpop.f32.mrf.mxu1 }
 0x5b8   : > { %v1649_v40 = vpop.f32.mrf.mxu0  ;;  %v3482_v41 = vpop.f32.mrf.mxu1 }
 0x5b9   : > { %v1725_v50 = vadd.f32 %v1724_v39, %v1649_v40 }
 0x5ba   : > { %v3473_v42 = vpop.f32.mrf.mxu0 }
 0x5bc   : > { %v1885_v43 = vpop.f32.mrf.mxu1 }
 0x5be   : > { %v3500_v44 = vpop.f32.mrf.mxu1 }
 0x5bf   : > { %v1804_v45 = vpop.f32.mrf.mxu0 }
 0x5c0   : > { %v1808_v52 = vadd.f32 %v1804_v45, %v1725_v50 }
 0x5c1   : > { %v3491_v46 = vpop.f32.mrf.mxu0 }
 0x5c2   : > { %v1889_v54 = vadd.f32 %v1885_v43, %v1808_v52 }
 0x5c4   : > { %v2047_v47 = vpop.f32.mrf.mxu1 }
 0x5c6   : > { %v3518_v48 = vpop.f32.mrf.mxu1 }
 0x5c7   : > { %v1966_v49 = vpop.f32.mrf.mxu0 }
 0x5c8   : > { %v1970_v56 = vadd.f32 %v1966_v49, %v1889_v54 }
 0x5c9   : > { %v3509_v51 = vpop.f32.mrf.mxu0 }
 0x5ca   : > { %v2051_v59 = vadd.f32 %v2047_v47, %v1970_v56 }
 0x5cc   : > { %v2209_v0 = vpop.f32.mrf.mxu1 }
 0x5ce   : > { %v3536_v53 = vpop.f32.mrf.mxu1 }
 0x5cf   : > { %v2128_v55 = vpop.f32.mrf.mxu0 }
 0x5d0   : > { %v2132_v61 = vadd.f32 %v2128_v55, %v2051_v59 }
 0x5d1   : > { %v3527_v57 = vpop.f32.mrf.mxu0 }
 0x5d2   : > { %v2213_v1 = vadd.f32 %v2209_v0, %v2132_v61 }
 0x5d4   : > { %v2371_v58 = vpop.f32.mrf.mxu1 }
 0x5d6   : > { %v3554_v60 = vpop.f32.mrf.mxu1 }
 0x5d7   : > { %v2290_v62 = vpop.f32.mrf.mxu0 }
 0x5d8   : > { %v2294_v3 = vadd.f32 %v2290_v62, %v2213_v1 }
 0x5d9   : > { %v3545_v63 = vpop.f32.mrf.mxu0 }
 0x5da   : > { %v2375_v6 = vadd.f32 %v2371_v58, %v2294_v3 }
 0x5dc   : > { %v2533_v2 = vpop.f32.mrf.mxu1 }
 0x5de   : > { %v3572_v4 = vpop.f32.mrf.mxu1 }
 0x5df   : > { %v2452_v5 = vpop.f32.mrf.mxu0 }
 0x5e0   : > { %v2456_v8 = vadd.f32 %v2452_v5, %v2375_v6 }
 0x5e1   : > { %v3563_v7 = vpop.f32.mrf.mxu0 }
 0x5e2   : > { %v2537_v11 = vadd.f32 %v2533_v2, %v2456_v8 }
 0x5e4   : > { %v2695_v9 = vpop.f32.mrf.mxu1 }
 0x5e6   : > { %v3590_v10 = vpop.f32.mrf.mxu1 }
 0x5e7   : > { %v2614_v12 = vpop.f32.mrf.mxu0 }
 0x5e8   : > { %v2618_v14 = vadd.f32 %v2614_v12, %v2537_v11 }
 0x5e9   : > { %v3581_v15 = vpop.f32.mrf.mxu0 }
 0x5ea   : > { %v2699_v18 = vadd.f32 %v2695_v9, %v2618_v14 }
 0x5ec   : > { %v2857_v17 = vpop.f32.mrf.mxu1 }
 0x5ee   : > { %v2776_v19 = vpop.f32.mrf.mxu0  ;;  %v3608_v21 = vpop.f32.mrf.mxu1 }
 0x5ef   : > { %v2780_v16 = vadd.f32 %v2776_v19, %v2699_v18 }
 0x5f0   : > { %v3599_v23 = vpop.f32.mrf.mxu0 }
 0x5f1   : > { %v2861_v24 = vadd.f32 %v2857_v17, %v2780_v16 }
 0x5f3   : > { %v2863_v26 = vadd.f32 %v2862_v22, %v2861_v24 }
 0x5f5   : > { %v2864_v13 = vmax.f32 %v2863_v26, 0.0 }
 0x5f7   : > { %3618 = vmatmul.mubr.msk.f32.vlgmr.msra.gmra.mxu0 %vm2870_vm0, %v2864_v13 }
 0x6b7   : > { %v2940_v25 = vpop.f32.mrf.mxu0 }
 0x6b8   : > { %v2941_v27 = vadd.f32 %v2940_v25, %v2869_v20 }
 0x6b9   : > { %v3619_v28 = vpop.f32.mrf.mxu0 }
 0x6ba   : > { %2945 = vst.msk [vmem:[%s378_s25] sm:$0x1] %vm2944_vm5, %v2941_v27 }
 0x6bb   : > { %3681 = shalt.err (!%p3678_p3)
}
 0x6bc   : > { %s3682_s22 = scalar_lea.hbm %s4496_s12, 16  ;;  %s3686_s24 = scalar_lea.hbm %s4542_s11, 32 }
 0x6bd   : > { %p3683_p4 = scmp.ne.s32.totalorder %s4496_s12, %s3682_s22  ;;  %p3687_p9 = scmp.lt.s32.totalorder %s4496_s12, %s4542_s11 }
 0x6be   : > { %p3688_p10 = scmp.lt.s32.totalorder %s3686_s24, %s3682_s22 }
 0x6bf   : > { %p3684_p7 = pnand %p3683_p4, %p3836_p5 }
 0x6c0   : > { %p3689_p11 = por %p3688_p10, %p3687_p9 }
 0x6c1   : > { %p3685_p8 = pneg %p3684_p7 }
 0x6c3   : > { %p3690_p12 = pnand %p3689_p11, %p3685_p8 }
 0x6c5   : > { %3693 = shalt.err (!%p3690_p12)
}
 0x6c6   : > { %3620 = dma.vmem_to_hbm [thread:$0]  (%p3836_p5), %s2960_s29, 16, %s4496_s12, %s2947_s14  }
 0x6c7 PF: > { %p3626_p13 = scmp.ge.s32.totalorder %s3728_s20, 2  ;;  %s2971_s0 = sand.u32 1, %s3716_s17  }
 0x6c8   : > { %s2972_s15 = scalar_lea.sflag [#allocation3], %s2971_s0 }
 0x6c9   : > { %p3623_p0 = pnand %p3626_p13, %p3840_p6 }
 0x6cb   : > { %p3624_p1 = pneg %p3623_p0 }
 0x6cd   : > { %3711 = dma.done.wait (%p3624_p1), %s2972_s15, 16  }
 0x6ce   : > { %3713 = vsyncadd (%p3624_p1), %s2972_s15, 4294967280  ;;  %p21_p2 = scmp.ge.s32.totalorder %s3823_s23, 4   ;;  %s4547_s17 = smov %s3720_s18 }
 0x6cf   : > { %s4548_s18 = smov %s3724_s19  ;;  %s4549_s19 = smov %s3834_s26 }
 0x6d0   : > { %s4550_s20 = smov %s3823_s23  ;;  %23 = sbr.rel (!%p21_p2) target bundleno = 5 (0x5), region = 120 }
 0x6d5   :  { %2976 = vsyncpa [#allocation3], 1 }
 0x6d6   :  { %2978 = vsyncpa [#allocation3 + $0x1], 1 }

</bundles_post_ra>
